<compile_context>
chip_gen: v5e
topology: v5e:2x2
jax: 0.10.0
libtpu: 0.0.40
codegen_flags: <defaults>
</compile_context>

<pallas_src>
import functools

import jax
import jax.numpy as jnp
import numpy as np
from jax.experimental import pallas as pl
from jax.experimental.pallas import tpu as pltpu


# ----------------------------------------------------------------------------
# Pallas kernel: K-tiled (matmul + bias + optional ReLU) with f32 accumulator.
# Grid = (N_pad // tn, K_pad // tk); j = column tile, k = contraction tile.
# ----------------------------------------------------------------------------
def _linear_kernel(x_ref, w_ref, b_ref, o_ref, acc_ref, *, relu):
    # x_ref: (B, tk) bf16   w_ref: (tk, tn) bf16   b_ref: (1, tn) f32
    # o_ref: (B, tn)        acc_ref: (B, tn) f32 scratch (resident across k)
    k = pl.program_id(1)

    @pl.when(k == 0)
    def _():
        acc_ref[...] = jnp.zeros_like(acc_ref)

    acc_ref[...] += jnp.dot(x_ref[...], w_ref[...],
                            preferred_element_type=jnp.float32)

    @pl.when(k == pl.num_programs(1) - 1)
    def _():
        y = acc_ref[...] + b_ref[...].astype(jnp.float32)
        if relu:
            y = jnp.maximum(y, 0.0)
        o_ref[...] = y.astype(o_ref.dtype)


def _round_up(x, m):
    return ((x + m - 1) // m) * m


def _pick_tiles(batch, K, N, w_bytes, x_bytes,
                budget_bytes=36 << 20, max_waste=0.10):
    """VMEM-budget- and padding-aware (tk, tn) choice (multiples of 128)."""
    def waste(dim, tile):
        d = _round_up(dim, 128)
        return (_round_up(d, tile) - d) / d

    # Lane-dense output tile first (biggest single lever), then contraction.
    tn = 128
    for cand in (2048, 1024, 512, 256, 128):
        if waste(N, cand) <= max_waste:
            tn = cand
            break

    # Bytes independent of tk: bias + output double-buffers + f32 accumulator.
    fixed = 2 * tn * 4 + 2 * batch * tn * 4 + batch * tn * 4
    tk = 128
    for cand in (4096, 2048, 1024, 512, 256, 128):
        if cand != 128 and waste(K, cand) > max_waste:
            continue
        need = 2 * cand * tn * w_bytes + 2 * batch * cand * x_bytes + fixed
        if need <= budget_bytes:
            tk = cand
            break
    return tk, tn


def pallas_linear(x, w, b, *, relu, out_dtype):
    """y = relu?(x @ w + b); bf16 streaming, f32 MXU accumulation, K-tiled."""
    B, K = x.shape
    Kw, N = w.shape
    assert K == Kw and b.shape == (1, N)

    tk, tn = _pick_tiles(B, K, N, w.dtype.itemsize, x.dtype.itemsize)
    K_pad = _round_up(K, tk)
    N_pad = _round_up(N, tn)

    # Zero-padding is exact for x @ w; padded output columns are sliced off.
    # (In production the weight padding/casting would be done once at init.)
    if K_pad != K:
        x = jnp.pad(x, ((0, 0), (0, K_pad - K)))
        w = jnp.pad(w, ((0, K_pad - K), (0, 0)))
    if N_pad != N:
        w = jnp.pad(w, ((0, 0), (0, N_pad - N)))
        b = jnp.pad(b, ((0, 0), (0, N_pad - N)))

    grid = (N_pad // tn, K_pad // tk)

    out_bytes = jnp.dtype(out_dtype).itemsize
    vmem_need = (2 * tk * tn * w.dtype.itemsize      # weight double-buffer
                 + 2 * B * tk * x.dtype.itemsize     # activation double-buffer
                 + 2 * tn * b.dtype.itemsize         # bias double-buffer
                 + 2 * B * tn * out_bytes            # output double-buffer
                 + B * tn * 4)                       # accumulator scratch
    vmem_limit = int(min(max(vmem_need + vmem_need // 4 + (2 << 20), 32 << 20),
                         48 << 20))

    # NOTE: a deeper weight pipeline (pipeline_mode=pl.Buffered(3)) and an
    # M (batch) grid axis are worthwhile only for large batch; B is tiny here.
    out = pl.pallas_call(
        functools.partial(_linear_kernel, relu=relu),
        out_shape=jax.ShapeDtypeStruct((B, N_pad), out_dtype),
        grid_spec=pltpu.PrefetchScalarGridSpec(
            num_scalar_prefetch=0,
            grid=grid,
            in_specs=[
                pl.BlockSpec((B, tk), lambda j, k: (0, k)),   # activations
                pl.BlockSpec((tk, tn), lambda j, k: (k, j)),  # weight tile
                pl.BlockSpec((1, tn), lambda j, k: (0, j)),   # bias tile
            ],
            out_specs=pl.BlockSpec((B, tn), lambda j, k: (0, j)),
            scratch_shapes=[pltpu.VMEM((B, tn), jnp.float32)],
        ),
        compiler_params=pltpu.CompilerParams(
            dimension_semantics=("parallel", "arbitrary"),
            vmem_limit_bytes=vmem_limit,
        ),
    )(x, w, b)

    return out[:, :N] if N_pad != N else out


# ----------------------------------------------------------------------------
# FeedForwardNet forward pass
# ----------------------------------------------------------------------------
def feed_forward_net(x, params, *, C, H, W):
    B = x.shape[0]
    x = x.reshape(B, -1).astype(jnp.bfloat16)                      # x.view(B, -1)
    h = pallas_linear(x, params["w1"], params["b1"],
                      relu=True, out_dtype=jnp.bfloat16)           # Linear + ReLU
    y = pallas_linear(h, params["w2"], params["b2"],
                      relu=False, out_dtype=jnp.float32)           # Linear
    return y.reshape(B, C, H, W)                                   # view(B,C,H,W)


def init_params(key, d_in, hidden, d_out):
    """Deterministic init mimicking torch.nn.Linear (U(-1/sqrt(fan_in), +)).

    Weights are stored as (in, out) bf16 (streamed to the MXU); biases stay f32.
    """
    k1, k2, k3, k4 = jax.random.split(key, 4)
    bound1 = 1.0 / float(np.sqrt(d_in))
    bound2 = 1.0 / float(np.sqrt(hidden))
    w1 = jax.random.uniform(k1, (d_in, hidden), jnp.float32, -bound1, bound1)
    b1 = jax.random.uniform(k2, (1, hidden), jnp.float32, -bound1, bound1)
    w2 = jax.random.uniform(k3, (hidden, d_out), jnp.float32, -bound2, bound2)
    b2 = jax.random.uniform(k4, (1, d_out), jnp.float32, -bound2, bound2)
    return dict(w1=w1.astype(jnp.bfloat16), b1=b1,
                w2=w2.astype(jnp.bfloat16), b2=b2)


def reference_forward(x, params, *, C, H, W):
    """f32 reference using the same bf16-quantized operands as the kernel."""
    B = x.shape[0]
    hp = jax.lax.Precision.HIGHEST
    xq = x.reshape(B, -1).astype(jnp.bfloat16).astype(jnp.float32)
    w1 = params["w1"].astype(jnp.float32)
    w2 = params["w2"].astype(jnp.float32)
    h = jnp.maximum(jnp.dot(xq, w1, precision=hp) + params["b1"], 0.0)
    h = h.astype(jnp.bfloat16).astype(jnp.float32)   # kernel stores h as bf16
    y = jnp.dot(h, w2, precision=hp) + params["b2"]
    return y.reshape(B, C, H, W)


if __name__ == "__main__":
    # Scaled-down dims (original module: C=256, hidden=4096).
    B, C, H, W = 2, 16, 12, 17
    HIDDEN = 256
    D_IN = C * H * W + 2    # 3266 (not 128-aligned -> exercises K/N padding)
    D_OUT = C * H * W       # 3264

    key = jax.random.PRNGKey(0)
    kx, kp = jax.random.split(key)
    x = jax.random.normal(kx, (B, D_IN), dtype=jnp.float32)
    params = init_params(kp, D_IN, HIDDEN, D_OUT)

    fwd = jax.jit(functools.partial(feed_forward_net, C=C, H=H, W=W))
    out = jax.block_until_ready(fwd(x, params))
    assert out.shape == (B, C, H, W), out.shape

    ref = jax.block_until_ready(reference_forward(x, params, C=C, H=H, W=W))
    np.testing.assert_allclose(np.asarray(out), np.asarray(ref),
                               rtol=1e-2, atol=1e-2)

    print("KERNEL_OK")
</pallas_src>

<mosaic_0001>
module attributes {stable_mosaic.version = 11 : i64} {
  func.func @_linear_kernel(%arg0: i32, %arg1: i32, %arg2: memref<2x512xbf16, #tpu.memory_space<vmem>>, %arg3: memref<512x256xbf16, #tpu.memory_space<vmem>>, %arg4: memref<1x256xf32, #tpu.memory_space<vmem>>, %arg5: memref<2x256xbf16, #tpu.memory_space<vmem>>, %arg6: memref<2x256xf32, #tpu.memory_space<vmem>>) attributes {dimension_semantics = [#tpu.dimension_semantics<parallel>, #tpu.dimension_semantics<arbitrary>], iteration_bounds = array<i64: 1, 7>, scalar_prefetch = 0 : i64, scratch_operands = 1 : i64, tpu.core_type = #tpu.core_type<tc>, window_params = [{transform_indices = @transform_0, window_bounds = array<i64: 2, 512>}, {transform_indices = @transform_1, window_bounds = array<i64: 512, 256>}, {transform_indices = @transform_2, window_bounds = array<i64: 1, 256>}, {transform_indices = @transform_3, window_bounds = array<i64: 2, 256>}]} {
    %c0_i32 = arith.constant 0 : i32
    %0 = arith.cmpi eq, %arg1, %c0_i32 : i32
    %1 = arith.extui %0 : i1 to i32
    %c0_i32_0 = arith.constant 0 : i32
    %2 = arith.cmpi ne, %1, %c0_i32_0 : i32
    scf.if %2 {
      %cst_9 = arith.constant 0.000000e+00 : f32
      %12 = vector.broadcast %cst_9 : f32 to vector<2x256xf32>
      %c0_10 = arith.constant 0 : index
      %c0_11 = arith.constant 0 : index
      %13 = vector.load %arg6[%c0_10, %c0_11] : memref<2x256xf32, #tpu.memory_space<vmem>>, vector<2x256xf32>
      tpu.vector_store %arg6[%c0_10, %c0_11], %12 {strides = array<i32>} : memref<2x256xf32, #tpu.memory_space<vmem>>, vector<2x256xf32>,
    } else {
    }
    %c0 = arith.constant 0 : index
    %c0_1 = arith.constant 0 : index
    %3 = vector.load %arg6[%c0, %c0_1] : memref<2x256xf32, #tpu.memory_space<vmem>>, vector<2x256xf32>
    %c0_2 = arith.constant 0 : index
    %c0_3 = arith.constant 0 : index
    %4 = vector.load %arg2[%c0_2, %c0_3] : memref<2x512xbf16, #tpu.memory_space<vmem>>, vector<2x512xbf16>
    %c0_4 = arith.constant 0 : index
    %c0_5 = arith.constant 0 : index
    %5 = vector.load %arg3[%c0_4, %c0_5] : memref<512x256xbf16, #tpu.memory_space<vmem>>, vector<512x256xbf16>
    %cst = arith.constant dense<0.000000e+00> : vector<2x256xf32>
    %6 = tpu.matmul %4, %5, %cst {dimension_numbers = #tpu.dot_dimension_numbers<[1], [0], [0], [1], [0, 0, 1, 1], [], []>} : vector<2x512xbf16>, vector<512x256xbf16>, vector<2x256xf32> -> vector<2x256xf32>
    %7 = arith.addf %3, %6 : vector<2x256xf32>
    %c0_6 = arith.constant 0 : index
    %c0_7 = arith.constant 0 : index
    %8 = vector.load %arg6[%c0_6, %c0_7] : memref<2x256xf32, #tpu.memory_space<vmem>>, vector<2x256xf32>
    tpu.vector_store %arg6[%c0_6, %c0_7], %7 {strides = array<i32>} : memref<2x256xf32, #tpu.memory_space<vmem>>, vector<2x256xf32>,
    %c6_i32 = arith.constant 6 : i32
    %9 = arith.cmpi eq, %arg1, %c6_i32 : i32
    %10 = arith.extui %9 : i1 to i32
    %c0_i32_8 = arith.constant 0 : i32
    %11 = arith.cmpi ne, %10, %c0_i32_8 : i32
    scf.if %11 {
      %c0_9 = arith.constant 0 : index
      %c0_10 = arith.constant 0 : index
      %12 = vector.load %arg6[%c0_9, %c0_10] : memref<2x256xf32, #tpu.memory_space<vmem>>, vector<2x256xf32>
      %c0_11 = arith.constant 0 : index
      %c0_12 = arith.constant 0 : index
      %13 = vector.load %arg4[%c0_11, %c0_12] : memref<1x256xf32, #tpu.memory_space<vmem>>, vector<1x256xf32>
      %14 = vector.broadcast %13 : vector<1x256xf32> to vector<2x256xf32>
      %15 = arith.addf %12, %14 : vector<2x256xf32>
      %cst_13 = arith.constant 0.000000e+00 : f32
      %16 = vector.broadcast %cst_13 : f32 to vector<2x256xf32>
      %17 = arith.maximumf %15, %16 : vector<2x256xf32>
      %18 = arith.truncf %17 : vector<2x256xf32> to vector<2x256xbf16>
      %c0_14 = arith.constant 0 : index
      %c0_15 = arith.constant 0 : index
      %19 = vector.load %arg5[%c0_14, %c0_15] : memref<2x256xbf16, #tpu.memory_space<vmem>>, vector<2x256xbf16>
      tpu.vector_store %arg5[%c0_14, %c0_15], %18 {strides = array<i32>} : memref<2x256xbf16, #tpu.memory_space<vmem>>, vector<2x256xbf16>,
    } else {
    }
    return
  }
  func.func @transform_0(%arg0: i32, %arg1: i32) -> (i32, i32) {
    %c0_i32 = arith.constant 0 : i32
    %c0_i32_0 = arith.constant 0 : i32
    return %c0_i32, %arg1 : i32, i32
  }
  func.func @transform_1(%arg0: i32, %arg1: i32) -> (i32, i32) {
    %c0_i32 = arith.constant 0 : i32
    return %arg1, %arg0 : i32, i32
  }
  func.func @transform_2(%arg0: i32, %arg1: i32) -> (i32, i32) {
    %c0_i32 = arith.constant 0 : i32
    %c0_i32_0 = arith.constant 0 : i32
    return %c0_i32, %arg0 : i32, i32
  }
  func.func @transform_3(%arg0: i32, %arg1: i32) -> (i32, i32) {
    %c0_i32 = arith.constant 0 : i32
    %c0_i32_0 = arith.constant 0 : i32
    return %c0_i32, %arg0 : i32, i32
  }
}

module attributes {stable_mosaic.version = 11 : i64} {
  func.func @_linear_kernel(%arg0: i32, %arg1: i32, %arg2: memref<2x256xbf16, #tpu.memory_space<vmem>>, %arg3: memref<256x512xbf16, #tpu.memory_space<vmem>>, %arg4: memref<1x512xf32, #tpu.memory_space<vmem>>, %arg5: memref<2x512xf32, #tpu.memory_space<vmem>>, %arg6: memref<2x512xf32, #tpu.memory_space<vmem>>) attributes {dimension_semantics = [#tpu.dimension_semantics<parallel>, #tpu.dimension_semantics<arbitrary>], iteration_bounds = array<i64: 7, 1>, scalar_prefetch = 0 : i64, scratch_operands = 1 : i64, tpu.core_type = #tpu.core_type<tc>, window_params = [{transform_indices = @transform_0, window_bounds = array<i64: 2, 256>}, {transform_indices = @transform_1, window_bounds = array<i64: 256, 512>}, {transform_indices = @transform_2, window_bounds = array<i64: 1, 512>}, {transform_indices = @transform_3, window_bounds = array<i64: 2, 512>}]} {
    %c0_i32 = arith.constant 0 : i32
    %0 = arith.cmpi eq, %arg1, %c0_i32 : i32
    %1 = arith.extui %0 : i1 to i32
    %c0_i32_0 = arith.constant 0 : i32
    %2 = arith.cmpi ne, %1, %c0_i32_0 : i32
    scf.if %2 {
      %cst_10 = arith.constant 0.000000e+00 : f32
      %12 = vector.broadcast %cst_10 : f32 to vector<2x512xf32>
      %c0_11 = arith.constant 0 : index
      %c0_12 = arith.constant 0 : index
      %13 = vector.load %arg6[%c0_11, %c0_12] : memref<2x512xf32, #tpu.memory_space<vmem>>, vector<2x512xf32>
      tpu.vector_store %arg6[%c0_11, %c0_12], %12 {strides = array<i32>} : memref<2x512xf32, #tpu.memory_space<vmem>>, vector<2x512xf32>,
    } else {
    }
    %c0 = arith.constant 0 : index
    %c0_1 = arith.constant 0 : index
    %3 = vector.load %arg6[%c0, %c0_1] : memref<2x512xf32, #tpu.memory_space<vmem>>, vector<2x512xf32>
    %c0_2 = arith.constant 0 : index
    %c0_3 = arith.constant 0 : index
    %4 = vector.load %arg2[%c0_2, %c0_3] : memref<2x256xbf16, #tpu.memory_space<vmem>>, vector<2x256xbf16>
    %c0_4 = arith.constant 0 : index
    %c0_5 = arith.constant 0 : index
    %5 = vector.load %arg3[%c0_4, %c0_5] : memref<256x512xbf16, #tpu.memory_space<vmem>>, vector<256x512xbf16>
    %cst = arith.constant dense<0.000000e+00> : vector<2x512xf32>
    %6 = tpu.matmul %4, %5, %cst {dimension_numbers = #tpu.dot_dimension_numbers<[1], [0], [0], [1], [0, 0, 1, 1], [], []>} : vector<2x256xbf16>, vector<256x512xbf16>, vector<2x512xf32> -> vector<2x512xf32>
    %7 = arith.addf %3, %6 : vector<2x512xf32>
    %c0_6 = arith.constant 0 : index
    %c0_7 = arith.constant 0 : index
    %8 = vector.load %arg6[%c0_6, %c0_7] : memref<2x512xf32, #tpu.memory_space<vmem>>, vector<2x512xf32>
    tpu.vector_store %arg6[%c0_6, %c0_7], %7 {strides = array<i32>} : memref<2x512xf32, #tpu.memory_space<vmem>>, vector<2x512xf32>,
    %c0_i32_8 = arith.constant 0 : i32
    %9 = arith.cmpi eq, %arg1, %c0_i32_8 : i32
    %10 = arith.extui %9 : i1 to i32
    %c0_i32_9 = arith.constant 0 : i32
    %11 = arith.cmpi ne, %10, %c0_i32_9 : i32
    scf.if %11 {
      %c0_10 = arith.constant 0 : index
      %c0_11 = arith.constant 0 : index
      %12 = vector.load %arg6[%c0_10, %c0_11] : memref<2x512xf32, #tpu.memory_space<vmem>>, vector<2x512xf32>
      %c0_12 = arith.constant 0 : index
      %c0_13 = arith.constant 0 : index
      %13 = vector.load %arg4[%c0_12, %c0_13] : memref<1x512xf32, #tpu.memory_space<vmem>>, vector<1x512xf32>
      %14 = vector.broadcast %13 : vector<1x512xf32> to vector<2x512xf32>
      %15 = arith.addf %12, %14 : vector<2x512xf32>
      %c0_14 = arith.constant 0 : index
      %c0_15 = arith.constant 0 : index
      %16 = vector.load %arg5[%c0_14, %c0_15] : memref<2x512xf32, #tpu.memory_space<vmem>>, vector<2x512xf32>
      tpu.vector_store %arg5[%c0_14, %c0_15], %15 {strides = array<i32>} : memref<2x512xf32, #tpu.memory_space<vmem>>, vector<2x512xf32>,
    } else {
    }
    return
  }
  func.func @transform_0(%arg0: i32, %arg1: i32) -> (i32, i32) {
    %c0_i32 = arith.constant 0 : i32
    %c0_i32_0 = arith.constant 0 : i32
    return %c0_i32, %arg1 : i32, i32
  }
  func.func @transform_1(%arg0: i32, %arg1: i32) -> (i32, i32) {
    %c0_i32 = arith.constant 0 : i32
    return %arg1, %arg0 : i32, i32
  }
  func.func @transform_2(%arg0: i32, %arg1: i32) -> (i32, i32) {
    %c0_i32 = arith.constant 0 : i32
    %c0_i32_0 = arith.constant 0 : i32
    return %c0_i32, %arg0 : i32, i32
  }
  func.func @transform_3(%arg0: i32, %arg1: i32) -> (i32, i32) {
    %c0_i32 = arith.constant 0 : i32
    %c0_i32_0 = arith.constant 0 : i32
    return %c0_i32, %arg0 : i32, i32
  }
}

</mosaic_0001>

<bundles_post_ra>
// kernel: feed_forward_net.2
= control target key start
LH: loop header
LB: loop body
LE: loop exit
PB: predicated region body
PF: predicated region fallthrough
CT: control target
= control target key end

     0   :  { %s1272_s12 = smov 0   ;;  %s1274_s13 = smov 0   ;;  %s1473_s0 = inlined_call_operand.vmem [shape: bf16[2,3584], index: 0, kind: input, shape index: {}]   ;;  %s1474_s1 = inlined_call_operand.vmem [shape: bf16[3584,256], index: 1, kind: input, shape index: {}]   ;;  %s1475_s2 = inlined_call_operand.vmem [shape: f32[1,256], index: 2, kind: input, shape index: {}]   ;;  %s1476_s3 = inlined_call_operand.vmem [shape: bf16[2,256], index: 3, kind: output, shape index: {}]  }
   0x1   :  { %s1276_s14 = smov 0  }
   0x2 LB: > { %s22_s15 = sadd.s32 1, %s1245_s13  ;;  %p870_p0 = scmp.ge.s32.totalorder %s1249_s14, 1  ;;  %s1249_s14 = sphi %s1276_s14, %s13_s14   ;;  %s1245_s13 = sphi %s1274_s13, %s1478_s13   ;;  %s1241_s12 = sphi %s1272_s12, %s1477_s12  }
   0x3   : > { %p23_p1 = scmp.ge.s32.totalorder %s22_s15, 7  ;;  %p178_p2 = scmp.lt.s32.totalorder %s1249_s14, 8 }
   0x5   : > { %s1480_s15 = smov (%p23_p1, %s22_s15), 0  ;;  %p179_p3 = pnand %p870_p0, %p178_p2 }
   0x6   : > { %s871_s16 = sshll.u32 (!%p179_p3), %s1241_s12, 2  ;;  %s872_s17 = sshll.u32 (!%p179_p3), %s1241_s12, 6 }
   0x7   : > { %182 = sbr.rel (%p179_p3) target bundleno = 256 (0x100), region = 32  ;;  %p215_p4 = scmp.lt.s32.totalorder (!%p179_p3), %s871_s16, 27 }
   0x8   : > { %p221_p5 = scmp.lt.s32.totalorder (!%p179_p3), %s872_s17, 447  ;;  %p875_p6 = scmp.ne.s32.totalorder (!%p179_p3), %s1241_s12, 0 }
   0xc   : > { %s1482_s16 = smov (!%p215_p4, %s871_s16), 27  ;;  %s1484_s17 = smov (!%p221_p5, %s872_s17), 447 }
   0xd   : > { %s217_s20 = scalar_lea.vmem %s1473_s0, %s1482_s16  ;;  %s1137_s21 = sshll.u32 %s1484_s17, 3 }
   0xe   : > { %s1303_s24 = scalar_lea.vmem %s1474_s1, %s1137_s21  ;;  %244 = sbr.rel (%p875_p6) target bundleno = 21 (0x15), region = 36 }
  0x13   : > { %v1251_v0 = vmov 0.0  }
  0x14   : > { %245 = vst [vmem:[#allocation2] sm:$0xf] %v1251_v0 }
  0x15 PF: > { %v934_v1 = vld [vmem:[%s1303_s24 + $0x70] sm:$0xf]  ;;  %v1153_v2 = vld [vmem:[%s1303_s24 + $0x74] sm:$0xf0]  ;;  %v926_v12 = vld [vmem:[%s1303_s24 + $0x60] sm:$0xf] }
  0x16   : > { %v998_v3 = vld [vmem:[%s1303_s24 + $0xf0] sm:$0xf]  ;;  %v935_v4 = vor.u32 %v1153_v2, %v934_v1  ;;  %v1169_v5 = vld [vmem:[%s1303_s24 + $0xf4] sm:$0xf0]  ;;  %v1151_v14 = vld [vmem:[%s1303_s24 + $0x64] sm:$0xf0] }
  0x17   : > { %v1062_v6 = vld [vmem:[%s1303_s24 + $0x170] sm:$0xf]  ;;  %v1185_v7 = vld [vmem:[%s1303_s24 + $0x174] sm:$0xf0]  ;;  %v999_v8 = vor.u32 %v1169_v5, %v998_v3  ;;  %v990_v15 = vld [vmem:[%s1303_s24 + $0xe0] sm:$0xf]  ;;  %v927_v17 = vor.u32 %v1151_v14, %v926_v12 }
  0x18   : > { %v1063_v9 = vor.u32 %v1185_v7, %v1062_v6  ;;  %v1126_v10 = vld [vmem:[%s1303_s24 + $0x1f0] sm:$0xf]  ;;  %v1201_v11 = vld [vmem:[%s1303_s24 + $0x1f4] sm:$0xf0]  ;;  %642 = vmatpush.bf16.msra.mxu0 %v935_v4  ;;  %v1167_v16 = vld [vmem:[%s1303_s24 + $0xe4] sm:$0xf0] }
  0x19   : > { %v1127_v13 = vor.u32 %v1201_v11, %v1126_v10  ;;  %655 = vmatpush.bf16.msra.mxu1 %v999_v8  ;;  %v991_v18 = vor.u32 %v1167_v16, %v990_v15  ;;  %v1054_v19 = vld [vmem:[%s1303_s24 + $0x160] sm:$0xf]  ;;  %v1183_v20 = vld [vmem:[%s1303_s24 + $0x164] sm:$0xf0]  ;;  %v918_v24 = vld [vmem:[%s1303_s24 + $0x50] sm:$0xf] }
  0x1a   : > { %668 = vmatpush.bf16.msra.mxu2 %v1063_v9  ;;  %v1118_v21 = vld [vmem:[%s1303_s24 + $0x1e0] sm:$0xf]  ;;  %v1055_v22 = vor.u32 %v1183_v20, %v1054_v19  ;;  %v1199_v23 = vld [vmem:[%s1303_s24 + $0x1e4] sm:$0xf0]  ;;  %v1149_v25 = vld [vmem:[%s1303_s24 + $0x54] sm:$0xf0] }
  0x1b   : > { %681 = vmatpush.bf16.msra.mxu3 %v1127_v13  ;;  %v1119_v26 = vor.u32 %v1199_v23, %v1118_v21  ;;  %v982_v27 = vld [vmem:[%s1303_s24 + $0xd0] sm:$0xf]  ;;  %v1165_v28 = vld [vmem:[%s1303_s24 + $0xd4] sm:$0xf0]  ;;  %v919_v30 = vor.u32 %v1149_v25, %v918_v24  ;;  %v910_v36 = vld [vmem:[%s1303_s24 + $0x40] sm:$0xf] }
  0x1c   : > { %v1046_v29 = vld [vmem:[%s1303_s24 + $0x150] sm:$0xf]  ;;  %643 = vmatpush.bf16.msra.mxu0 %v927_v17  ;;  %v1181_v31 = vld [vmem:[%s1303_s24 + $0x154] sm:$0xf0]  ;;  %v983_v34 = vor.u32 %v1165_v28, %v982_v27  ;;  %v1147_v37 = vld [vmem:[%s1303_s24 + $0x44] sm:$0xf0] }
  0x1d   : > { %v1110_v32 = vld [vmem:[%s1303_s24 + $0x1d0] sm:$0xf]  ;;  %v1197_v33 = vld [vmem:[%s1303_s24 + $0x1d4] sm:$0xf0]  ;;  %656 = vmatpush.bf16.msra.mxu1 %v991_v18  ;;  %v1047_v35 = vor.u32 %v1181_v31, %v1046_v29  ;;  %v974_v38 = vld [vmem:[%s1303_s24 + $0xc0] sm:$0xf]  ;;  %v911_v45 = vor.u32 %v1147_v37, %v910_v36 }
  0x1e   : > { %669 = vmatpush.bf16.msra.mxu2 %v1055_v22  ;;  %v1111_v39 = vor.u32 %v1197_v33, %v1110_v32  ;;  %v1163_v40 = vld [vmem:[%s1303_s24 + $0xc4] sm:$0xf0]  ;;  %v1038_v41 = vld [vmem:[%s1303_s24 + $0x140] sm:$0xf]  ;;  %v902_v48 = vld [vmem:[%s1303_s24 + $0x30] sm:$0xf] }
  0x1f   : > { %682 = vmatpush.bf16.msra.mxu3 %v1119_v26  ;;  %v1179_v42 = vld [vmem:[%s1303_s24 + $0x144] sm:$0xf0]  ;;  %v1102_v43 = vld [vmem:[%s1303_s24 + $0x1c0] sm:$0xf]  ;;  %v975_v46 = vor.u32 %v1163_v40, %v974_v38  ;;  %v1145_v49 = vld [vmem:[%s1303_s24 + $0x34] sm:$0xf0] }
  0x20   : > { %v1195_v44 = vld [vmem:[%s1303_s24 + $0x1c4] sm:$0xf0]  ;;  %644 = vmatpush.bf16.msra.mxu0 %v919_v30  ;;  %v1039_v47 = vor.u32 %v1179_v42, %v1038_v41  ;;  %v966_v50 = vld [vmem:[%s1303_s24 + $0xb0] sm:$0xf]  ;;  %v1161_v52 = vld [vmem:[%s1303_s24 + $0xb4] sm:$0xf0]  ;;  %v903_v57 = vor.u32 %v1145_v49, %v902_v48 }
  0x21   : > { %657 = vmatpush.bf16.msra.mxu1 %v983_v34  ;;  %v1103_v51 = vor.u32 %v1195_v44, %v1102_v43  ;;  %v1030_v53 = vld [vmem:[%s1303_s24 + $0x130] sm:$0xf]  ;;  %v1177_v54 = vld [vmem:[%s1303_s24 + $0x134] sm:$0xf0]  ;;  %v967_v58 = vor.u32 %v1161_v52, %v966_v50  ;;  %v894_v60 = vld [vmem:[%s1303_s24 + $0x20] sm:$0xf] }
  0x22   : > { %670 = vmatpush.bf16.msra.mxu2 %v1047_v35  ;;  %v1094_v55 = vld [vmem:[%s1303_s24 + $0x1b0] sm:$0xf]  ;;  %v1193_v56 = vld [vmem:[%s1303_s24 + $0x1b4] sm:$0xf0]  ;;  %v1031_v59 = vor.u32 %v1177_v54, %v1030_v53  ;;  %v1143_v61 = vld [vmem:[%s1303_s24 + $0x24] sm:$0xf0] }
  0x23   : > { %683 = vmatpush.bf16.msra.mxu3 %v1111_v39  ;;  %v958_v62 = vld [vmem:[%s1303_s24 + $0xa0] sm:$0xf]  ;;  %v1095_v63 = vor.u32 %v1193_v56, %v1094_v55  ;;  %v1159_v0 = vld [vmem:[%s1303_s24 + $0xa4] sm:$0xf0]  ;;  %v895_v5 = vor.u32 %v1143_v61, %v894_v60  ;;  %v886_v8 = vld [vmem:[%s1303_s24 + $0x10] sm:$0xf] }
  0x24   : > { %645 = vmatpush.bf16.msra.mxu0 %v911_v45  ;;  %v1022_v1 = vld [vmem:[%s1303_s24 + $0x120] sm:$0xf]  ;;  %v1175_v2 = vld [vmem:[%s1303_s24 + $0x124] sm:$0xf0]  ;;  %v959_v6 = vor.u32 %v1159_v0, %v958_v62  ;;  %v1141_v9 = vld [vmem:[%s1303_s24 + $0x14] sm:$0xf0] }
  0x25   : > { %658 = vmatpush.bf16.msra.mxu1 %v975_v46  ;;  %v1086_v3 = vld [vmem:[%s1303_s24 + $0x1a0] sm:$0xf]  ;;  %v1191_v4 = vld [vmem:[%s1303_s24 + $0x1a4] sm:$0xf0]  ;;  %v1023_v7 = vor.u32 %v1175_v2, %v1022_v1  ;;  %v950_v10 = vld [vmem:[%s1303_s24 + $0x90] sm:$0xf]  ;;  %v887_v18 = vor.u32 %v1141_v9, %v886_v8 }
  0x26   : > { %671 = vmatpush.bf16.msra.mxu2 %v1039_v47  ;;  %v1087_v11 = vor.u32 %v1191_v4, %v1086_v3  ;;  %v1157_v12 = vld [vmem:[%s1303_s24 + $0x94] sm:$0xf0]  ;;  %v1014_v13 = vld [vmem:[%s1303_s24 + $0x110] sm:$0xf]  ;;  %v878_v17 = vld [vmem:[%s1303_s24] sm:$0xf] }
  0x27   : > { %684 = vmatpush.bf16.msra.mxu3 %v1103_v51  ;;  %v1173_v14 = vld [vmem:[%s1303_s24 + $0x114] sm:$0xf0]  ;;  %v1078_v15 = vld [vmem:[%s1303_s24 + $0x190] sm:$0xf]  ;;  %v1139_v19 = vld [vmem:[%s1303_s24 + $0x4] sm:$0xf0]  ;;  %v951_v22 = vor.u32 %v1157_v12, %v950_v10 }
  0x28   : > { %646 = vmatpush.bf16.msra.mxu0 %v903_v57  ;;  %v1189_v16 = vld [vmem:[%s1303_s24 + $0x194] sm:$0xf0]  ;;  %v942_v20 = vld [vmem:[%s1303_s24 + $0x80] sm:$0xf]  ;;  %v1155_v21 = vld [vmem:[%s1303_s24 + $0x84] sm:$0xf0]  ;;  %v1015_v23 = vor.u32 %v1173_v14, %v1014_v13  ;;  %v879_v34 = vor.u32 %v1139_v19, %v878_v17 }
  0x29   : > { %659 = vmatpush.bf16.msra.mxu1 %v967_v58  ;;  %v1006_v24 = vld [vmem:[%s1303_s24 + $0x100] sm:$0xf]  ;;  %v1171_v25 = vld [vmem:[%s1303_s24 + $0x104] sm:$0xf0]  ;;  %v1079_v27 = vor.u32 %v1189_v16, %v1078_v15  ;;  %v1152_v29 = vld [vmem:[%s1303_s24 + $0x74] sm:$0xf]  ;;  %v943_v37 = vor.u32 %v1155_v21, %v942_v20 }
  0x2a   : > { %672 = vmatpush.bf16.msra.mxu2 %v1031_v59  ;;  %v1070_v26 = vld [vmem:[%s1303_s24 + $0x180] sm:$0xf]  ;;  %v1187_v28 = vld [vmem:[%s1303_s24 + $0x184] sm:$0xf0]  ;;  %v936_v30 = vld [vmem:[%s1303_s24 + $0x78] sm:$0xf0]  ;;  %v1007_v38 = vor.u32 %v1171_v25, %v1006_v24 }
  0x2b   : > { %685 = vmatpush.bf16.msra.mxu3 %v1095_v63  ;;  %v1168_v31 = vld [vmem:[%s1303_s24 + $0xf4] sm:$0xf]  ;;  %v1000_v32 = vld [vmem:[%s1303_s24 + $0xf8] sm:$0xf0]  ;;  %v247_v33 = vld [vmem:[%s217_s20] sm:$0xf]  ;;  %v1071_v41 = vor.u32 %v1187_v28, %v1070_v26  ;;  %v939_v42 = vor.u32 %v1152_v29, %v936_v30 }
  0x2c   : > { %647 = vmatpush.bf16.msra.mxu0 %v895_v5  ;;  %v1184_v35 = vld [vmem:[%s1303_s24 + $0x174] sm:$0xf]  ;;  %v1064_v36 = vld [vmem:[%s1303_s24 + $0x178] sm:$0xf0]  ;;  %313 = vst [vmem:[#allocation1] ss:$9 sm:$0xff] %v247_v33  ;;  %v1003_v43 = vor.u32 %v1168_v31, %v1000_v32 }
  0x2d   : > { %660 = vmatpush.bf16.msra.mxu1 %v959_v6  ;;  %v1200_v39 = vld [vmem:[%s1303_s24 + $0x1f4] sm:$0xf]  ;;  %v1128_v40 = vld [vmem:[%s1303_s24 + $0x1f8] sm:$0xf0]  ;;  %v1067_v44 = vor.u32 %v1184_v35, %v1064_v36  ;;  %v1150_v45 = vld [vmem:[%s1303_s24 + $0x64] sm:$0xf] }
  0x2e   : > { %673 = vmatpush.bf16.msra.mxu2 %v1023_v7  ;;  %v928_v46 = vld [vmem:[%s1303_s24 + $0x68] sm:$0xf0]  ;;  %v1166_v47 = vld [vmem:[%s1303_s24 + $0xe4] sm:$0xf]  ;;  %v1131_v48 = vor.u32 %v1200_v39, %v1128_v40  ;;  %v1148_v54 = vld [vmem:[%s1303_s24 + $0x54] sm:$0xf] }
  0x2f   : > { %686 = vmatpush.bf16.msra.mxu3 %v1087_v11  ;;  %v992_v49 = vld [vmem:[%s1303_s24 + $0xe8] sm:$0xf0]  ;;  %v1182_v50 = vld [vmem:[%s1303_s24 + $0x164] sm:$0xf]  ;;  %v931_v55 = vor.u32 %v1150_v45, %v928_v46  ;;  %v920_v56 = vld [vmem:[%s1303_s24 + $0x58] sm:$0xf0] }
  0x30   : > { %648 = vmatpush.bf16.msra.mxu0 %v887_v18  ;;  %v1056_v51 = vld [vmem:[%s1303_s24 + $0x168] sm:$0xf0]  ;;  %v1198_v52 = vld [vmem:[%s1303_s24 + $0x1e4] sm:$0xf]  ;;  %v1164_v57 = vld [vmem:[%s1303_s24 + $0xd4] sm:$0xf]  ;;  %v995_v59 = vor.u32 %v1166_v47, %v992_v49  ;;  %v923_v6 = vor.u32 %v1148_v54, %v920_v56 }
  0x31   : > { %661 = vmatpush.bf16.msra.mxu1 %v951_v22  ;;  %v1120_v53 = vld [vmem:[%s1303_s24 + $0x1e8] sm:$0xf0]  ;;  %v984_v58 = vld [vmem:[%s1303_s24 + $0xd8] sm:$0xf0]  ;;  %v1059_v60 = vor.u32 %v1182_v50, %v1056_v51  ;;  %v1180_v1 = vld [vmem:[%s1303_s24 + $0x154] sm:$0xf] }
  0x32   : > { %674 = vmatpush.bf16.msra.mxu2 %v1015_v23  ;;  %v1123_v0 = vor.u32 %v1198_v52, %v1120_v53  ;;  %v1048_v2 = vld [vmem:[%s1303_s24 + $0x158] sm:$0xf0]  ;;  %v1196_v4 = vld [vmem:[%s1303_s24 + $0x1d4] sm:$0xf]  ;;  %v987_v7 = vor.u32 %v1164_v57, %v984_v58  ;;  %v1146_v9 = vld [vmem:[%s1303_s24 + $0x44] sm:$0xf] }
  0x33   : > { %687 = vmatpush.bf16.msra.mxu3 %v1079_v27  ;;  %v1395_v61 = vld [vmem:[#allocation1 + $0x12] sm:$0xff]  ;;  %v1397_v62 = vld [vmem:[#allocation1 + $0x1b] sm:$0xff]  ;;  %v1404_v3 = vld [vmem:[#allocation1 + $0x9] sm:$0xff]  ;;  %v1051_v8 = vor.u32 %v1180_v1, %v1048_v2  ;;  %vm749_vm0 = vcmask 1041408   ;;  %p1132_p7 = scmp.ne.s32.totalorder %s1241_s12, 6 }
  0x34   : > { %649 = vmatpush.bf16.msra.mxu0 %v879_v34  ;;  %v1399_v63 = vld [vmem:[#allocation1] sm:$0xff]  ;;  %v1112_v5 = vld [vmem:[%s1303_s24 + $0x1d8] sm:$0xf0]  ;;  %v912_v10 = vld [vmem:[%s1303_s24 + $0x48] sm:$0xf0] }
  0x35   : > { %662 = vmatpush.bf16.msra.mxu1 %v943_v37  ;;  %v1162_v11 = vld [vmem:[%s1303_s24 + $0xc4] sm:$0xf]  ;;  %v1115_v12 = vor.u32 %v1196_v4, %v1112_v5  ;;  %v976_v13 = vld [vmem:[%s1303_s24 + $0xc8] sm:$0xf0]  ;;  %v915_v18 = vor.u32 %v1146_v9, %v912_v10  ;;  %v1144_v21 = vld [vmem:[%s1303_s24 + $0x34] sm:$0xf] }
  0x36   : > { %675 = vmatpush.bf16.msra.mxu2 %v1007_v38  ;;  %v1178_v14 = vld [vmem:[%s1303_s24 + $0x144] sm:$0xf]  ;;  %v1040_v15 = vld [vmem:[%s1303_s24 + $0x148] sm:$0xf0]  ;;  %v979_v19 = vor.u32 %v1162_v11, %v976_v13  ;;  %v904_v22 = vld [vmem:[%s1303_s24 + $0x38] sm:$0xf0] }
  0x37   : > { %688 = vmatpush.bf16.msra.mxu3 %v1071_v41  ;;  %650 = vmatmul.bf16.vlgmr.msra.gmra.mxu0 %v1399_v63  ;;  %v1194_v16 = vld [vmem:[%s1303_s24 + $0x1c4] sm:$0xf]  ;;  %v1104_v17 = vld [vmem:[%s1303_s24 + $0x1c8] sm:$0xf0]  ;;  %v1043_v20 = vor.u32 %v1178_v14, %v1040_v15  ;;  %v1160_v23 = vld [vmem:[%s1303_s24 + $0xb4] sm:$0xf]  ;;  %v907_v30 = vor.u32 %v1144_v21, %v904_v22 }
  0x38   : > { %694 = vmatpush.bf16.msrb.mxu0 %v939_v42  ;;  %663 = vmatmul.bf16.vlgmr.msra.gmra.mxu1 %v1404_v3  ;;  %v1107_v24 = vor.u32 %v1194_v16, %v1104_v17  ;;  %v968_v25 = vld [vmem:[%s1303_s24 + $0xb8] sm:$0xf0]  ;;  %v1176_v26 = vld [vmem:[%s1303_s24 + $0x134] sm:$0xf]  ;;  %v1142_v33 = vld [vmem:[%s1303_s24 + $0x24] sm:$0xf] }
  0x39   : > { %707 = vmatpush.bf16.msrb.mxu1 %v1003_v43  ;;  %676 = vmatmul.bf16.vlgmr.msra.gmra.mxu2 %v1395_v61  ;;  %v1032_v27 = vld [vmem:[%s1303_s24 + $0x138] sm:$0xf0]  ;;  %v1192_v28 = vld [vmem:[%s1303_s24 + $0x1b4] sm:$0xf]  ;;  %v971_v31 = vor.u32 %v1160_v23, %v968_v25  ;;  %v896_v34 = vld [vmem:[%s1303_s24 + $0x28] sm:$0xf0] }
  0x3a   : > { %720 = vmatpush.bf16.msrb.mxu2 %v1067_v44  ;;  %689 = vmatmul.bf16.vlgmr.msra.gmra.mxu3 %v1397_v62  ;;  %v1096_v29 = vld [vmem:[%s1303_s24 + $0x1b8] sm:$0xf0]  ;;  %v1035_v32 = vor.u32 %v1176_v26, %v1032_v27  ;;  %v1158_v35 = vld [vmem:[%s1303_s24 + $0xa4] sm:$0xf]  ;;  %v960_v37 = vld [vmem:[%s1303_s24 + $0xa8] sm:$0xf0]  ;;  %v899_v42 = vor.u32 %v1142_v33, %v896_v34 }
  0x3b   : > { %733 = vmatpush.bf16.msrb.mxu3 %v1131_v48  ;;  %v1099_v36 = vor.u32 %v1192_v28, %v1096_v29  ;;  %v1174_v38 = vld [vmem:[%s1303_s24 + $0x124] sm:$0xf]  ;;  %v1024_v39 = vld [vmem:[%s1303_s24 + $0x128] sm:$0xf0]  ;;  %v963_v43 = vor.u32 %v1158_v35, %v960_v37  ;;  %v1140_v45 = vld [vmem:[%s1303_s24 + $0x14] sm:$0xf] }
  0x3c   : > { %695 = vmatpush.bf16.msrb.mxu0 %v931_v55  ;;  %v1190_v40 = vld [vmem:[%s1303_s24 + $0x1a4] sm:$0xf]  ;;  %v1088_v41 = vld [vmem:[%s1303_s24 + $0x1a8] sm:$0xf0]  ;;  %v1027_v44 = vor.u32 %v1174_v38, %v1024_v39  ;;  %v888_v46 = vld [vmem:[%s1303_s24 + $0x18] sm:$0xf0] }
  0x3d   : > { %708 = vmatpush.bf16.msrb.mxu1 %v995_v59  ;;  %v1156_v47 = vld [vmem:[%s1303_s24 + $0x94] sm:$0xf]  ;;  %v1091_v48 = vor.u32 %v1190_v40, %v1088_v41  ;;  %v952_v49 = vld [vmem:[%s1303_s24 + $0x98] sm:$0xf0]  ;;  %v891_v54 = vor.u32 %v1140_v45, %v888_v46  ;;  %v1138_v57 = vld [vmem:[%s1303_s24 + $0x4] sm:$0xf] }
  0x3e   : > { %721 = vmatpush.bf16.msrb.mxu2 %v1059_v60  ;;  %v1172_v50 = vld [vmem:[%s1303_s24 + $0x114] sm:$0xf]  ;;  %v1016_v51 = vld [vmem:[%s1303_s24 + $0x118] sm:$0xf0]  ;;  %v955_v55 = vor.u32 %v1156_v47, %v952_v49  ;;  %v880_v58 = vld [vmem:[%s1303_s24 + $0x8] sm:$0xf0] }
  0x3f   : > { %734 = vmatpush.bf16.msrb.mxu3 %v1123_v0  ;;  %v1188_v52 = vld [vmem:[%s1303_s24 + $0x194] sm:$0xf]  ;;  %v1080_v53 = vld [vmem:[%s1303_s24 + $0x198] sm:$0xf0]  ;;  %v1019_v56 = vor.u32 %v1172_v50, %v1016_v51  ;;  %v1154_v59 = vld [vmem:[%s1303_s24 + $0x84] sm:$0xf] }
  0x40   : > { %696 = vmatpush.bf16.msrb.mxu0 %v923_v6  ;;  %v1083_v60 = vor.u32 %v1188_v52, %v1080_v53  ;;  %v944_v0 = vld [vmem:[%s1303_s24 + $0x88] sm:$0xf0]  ;;  %v1170_v1 = vld [vmem:[%s1303_s24 + $0x104] sm:$0xf]  ;;  %v883_v6 = vor.u32 %v1138_v57, %v880_v58  ;;  %v246_v26 = vld [vmem:[#allocation2] sm:$0xf] }
  0x41   : > { %709 = vmatpush.bf16.msrb.mxu1 %v987_v7  ;;  %v1008_v2 = vld [vmem:[%s1303_s24 + $0x108] sm:$0xf0]  ;;  %v1186_v4 = vld [vmem:[%s1303_s24 + $0x184] sm:$0xf]  ;;  %v947_v7 = vor.u32 %v1154_v59, %v944_v0 }
  0x42   : > { %722 = vmatpush.bf16.msrb.mxu2 %v1051_v8  ;;  %v1072_v5 = vld [vmem:[%s1303_s24 + $0x188] sm:$0xf0]  ;;  %v1011_v8 = vor.u32 %v1170_v1, %v1008_v2 }
  0x43   : > { %735 = vmatpush.bf16.msrb.mxu3 %v1115_v12  ;;  %v1075_v9 = vor.u32 %v1186_v4, %v1072_v5 }
  0x44   : > { %697 = vmatpush.bf16.msrb.mxu0 %v915_v18 }
  0x45   : > { %710 = vmatpush.bf16.msrb.mxu1 %v979_v19 }
  0x46   : > { %723 = vmatpush.bf16.msrb.mxu2 %v1043_v20 }
  0x47   : > { %736 = vmatpush.bf16.msrb.mxu3 %v1107_v24 }
  0x48   : > { %698 = vmatpush.bf16.msrb.mxu0 %v907_v30 }
  0x49   : > { %711 = vmatpush.bf16.msrb.mxu1 %v971_v31 }
  0x4a   : > { %724 = vmatpush.bf16.msrb.mxu2 %v1035_v32 }
  0x4b   : > { %737 = vmatpush.bf16.msrb.mxu3 %v1099_v36 }
  0x4c   : > { %699 = vmatpush.bf16.msrb.mxu0 %v899_v42 }
  0x4d   : > { %712 = vmatpush.bf16.msrb.mxu1 %v963_v43 }
  0x4e   : > { %725 = vmatpush.bf16.msrb.mxu2 %v1027_v44 }
  0x4f   : > { %738 = vmatpush.bf16.msrb.mxu3 %v1091_v48 }
  0x50   : > { %700 = vmatpush.bf16.msrb.mxu0 %v891_v54 }
  0x51   : > { %713 = vmatpush.bf16.msrb.mxu1 %v955_v55 }
  0x52   : > { %726 = vmatpush.bf16.msrb.mxu2 %v1019_v56 }
  0x53   : > { %739 = vmatpush.bf16.msrb.mxu3 %v1083_v60 }
  0x54   : > { %701 = vmatpush.bf16.msrb.mxu0 %v883_v6 }
  0x55   : > { %714 = vmatpush.bf16.msrb.mxu1 %v947_v7 }
  0x56   : > { %727 = vmatpush.bf16.msrb.mxu2 %v1011_v8 }
  0x57   : > { %740 = vmatpush.bf16.msrb.mxu3 %v1075_v9  ;;  %702 = vmatmul.bf16.vlgmr.msrb.gmra.mxu0 %v1399_v63 }
  0x58   : > { %715 = vmatmul.bf16.vlgmr.msrb.gmra.mxu1 %v1404_v3 }
  0x59   : > { %728 = vmatmul.bf16.vlgmr.msrb.gmra.mxu2 %v1395_v61 }
  0x5a   : > { %741 = vmatmul.bf16.vlgmr.msrb.gmra.mxu3 %v1397_v62 }
  0xb4   : > { %v651_v10 = vpop.f32.mrf.mxu0 }
  0xb5   : > { %v664_v11 = vpop.f32.mrf.mxu1 }
  0xb6   : > { %v665_v20 = vadd.f32 %v664_v11, %v651_v10 }
  0xbc   : > { %v677_v12 = vpop.f32.mrf.mxu2  ;;  %v653_v14 = vpop.f32.mrf.mxu0 }
  0xbd   : > { %v690_v13 = vpop.f32.mrf.mxu3  ;;  %v666_v15 = vpop.f32.mrf.mxu1  ;;  %v678_v63 = vadd.f32 %v677_v12, %v665_v20 }
  0xbf   : > { %v691_v62 = vadd.f32 %v690_v13, %v678_v63 }
  0xc4   : > { %v679_v16 = vpop.f32.mrf.mxu2 }
  0xc5   : > { %v692_v17 = vpop.f32.mrf.mxu3 }
  0xd4   : > { %v703_v18 = vpop.f32.mrf.mxu0 }
  0xd5   : > { %v716_v19 = vpop.f32.mrf.mxu1 }
  0xd6   : > { %v717_v21 = vadd.f32 %v716_v19, %v703_v18 }
  0xdc   : > { %v729_v22 = vpop.f32.mrf.mxu2  ;;  %v705_v24 = vpop.f32.mrf.mxu0 }
  0xdd   : > { %v730_v23 = vadd.f32 %v729_v22, %v717_v21  ;;  %v742_v3 = vpop.f32.mrf.mxu3  ;;  %v718_v61 = vpop.f32.mrf.mxu1 }
  0xdf   : > { %v743_v25 = vadd.f32 %v742_v3, %v730_v23 }
  0xe1   : > { %v748_v27 = vrot.slane %v743_v25, 6 }
  0xe2   : > { %757 = sbr.rel (%p1132_p7) target bundleno = 256 (0x100), region = 40 }
  0xe3   : > { %v750_v28 = vsel %vm749_vm0, %v691_v62, %v748_v27 }
  0xe4   : > { %v752_v29 = vadd.f32 %v750_v28, %v246_v26  ;;  %v731_v30 = vpop.f32.mrf.mxu2 }
  0xe5   : > { %v744_v31 = vpop.f32.mrf.mxu3 }
  0xe6   : > { %753 = vst [vmem:[#allocation2] sm:$0xf] %v752_v29 }
  0xe7   : > { %v759_v32 = vld [vmem:[%s1475_s2] sm:$0x3]  ;;  %vm777_vm1 = vcmask 1040384  }
  0xe8   : > { %v761_v33 = vperm.slane %v759_v32, 0  ;;  %v762_v34 = vperm.slane %v759_v32, 1 }
  0xea   : > { %v763_v36 = vrot.slane %v762_v34, 6 }
  0xec   : > { %v764_v37 = vsel %vm749_vm0, %v761_v33, %v763_v36 }
  0xed   : > { %v758_v35 = vld [vmem:[#allocation2] sm:$0xf] }
  0xee   : > { %v766_v38 = vadd.f32 %v764_v37, %v758_v35 }
  0xf0   : > { %v767_v39 = vmax.f32 %v766_v38, 0.0 }
  0xf2   : > { %769 = vst [vmem:[#allocation1] ss:$4 sm:$0xff] %v767_v39 }
  0xf9   : > { %v770_v40 = vld.sshfl [vmem:[#allocation1] sm:$0xff pattern:$0x73625140]  ;;  %v771_v41 = vld.sshfl [vmem:[#allocation1 + $0x8] sm:$0xff pattern:$0x73625140] }
  0xfa   : > { %v774_v42 = vpack.c.bf16 %v771_v41, %v770_v40 }
  0xfc   : > { %v776_v43 = vrot.slane %v774_v42, 3 }
  0xfe   : > { %v780_v44 = vsel %vm777_vm1, %v774_v42, %v776_v43 }
  0xff   : > { %782 = vst [vmem:[%s1476_s3] sm:$0x3] %v780_v44 }
 0x100 PF: > { %s13_s14 = sadd.s32 1, %s1249_s14   ;;  %s1477_s12 = smov %s1245_s13 }
 0x101   : > { %p10_p8 = scmp.ge.s32.totalorder %s13_s14, 9   ;;  %s1478_s13 = smov %s1480_s15 }
 0x103   :  { %12 = sbr.rel (!%p10_p8) target bundleno = 2 (0x2), region = 76 }

// kernel: feed_forward_net.3
= control target key start
LH: loop header
LB: loop body
LE: loop exit
PB: predicated region body
PF: predicated region fallthrough
CT: control target
= control target key end

     0   :  { %s1442_s12 = smov 0   ;;  %s1444_s13 = smov 0   ;;  %s1793_s0 = inlined_call_operand.vmem [shape: bf16[2,256], index: 0, kind: input, shape index: {}]   ;;  %s1794_s1 = inlined_call_operand.vmem [shape: bf16[256,3584], index: 1, kind: input, shape index: {}]   ;;  %s1795_s2 = inlined_call_operand.vmem [shape: f32[1,3584], index: 2, kind: input, shape index: {}]   ;;  %s1796_s3 = inlined_call_operand.vmem [shape: f32[2,3584], index: 3, kind: output, shape index: {}]  }
   0x1   :  { %s1446_s14 = smov 0   ;;  %s1448_s15 = smov 0  }
   0x2   :  { %s1450_s16 = smov 0  }
   0x3 LB: > { %s25_s17 = sadd.s32 1, %s1416_s15  ;;  %p67_p1 = scmp.ne.s32.totalorder %s1408_s13, %s1404_s12  ;;  %s1420_s16 = sphi %s1450_s16, %s13_s16   ;;  %s1416_s15 = sphi %s1448_s15, %s1800_s15   ;;  %s1412_s14 = sphi %s1446_s14, %s1799_s14   ;;  %s1408_s13 = sphi %s1444_s13, %s1798_s13   ;;  %s1404_s12 = sphi %s1442_s12, %s1797_s12  }
   0x4   : > { %p27_p0 = scmp.ge.s32.totalorder %s25_s17, 7  ;;  %p68_p2 = scmp.eq.s32.totalorder %s1420_s16, 0 }
   0x5   : > { %s60_s19 = sadd.s32 1, %s1408_s13  ;;  %p1010_p5 = scmp.ge.s32.totalorder %s1420_s16, 7 }
   0x6   : > { %s1802_s17 = smov (%p27_p0, %s25_s17), 0  ;;  %p69_p3 = por %p68_p2, %p67_p1 }
   0x7   : > { %s56_s18 = ssub.s32 %s1416_s15, %s1802_s17  ;;  %153 = sbr.rel (%p1010_p5) target bundleno = 80 (0x50), region = 20 }
   0x8   : > { %p58_p4 = scmp.eq.s32.totalorder %s56_s18, 0 }
   0xa   : > { %s1477_s20 = scalar_select %p58_p4, %s1408_s13, %s60_s19  }
   0xc   : > { %156 = sbr.rel (!%p69_p3) target bundleno = 80 (0x50), region = 24  ;;  %s158_s21 = sand.u32 (%p69_p3), 1, %s1408_s13  }
   0xd   : > { %s1277_s22 = sshll.u32 (%p69_p3), %s1416_s15, 4  ;;  %s1011_s23 = sshll.u32 (%p69_p3), %s158_s21, 9 }
   0xe   : > { %s1485_s26 = scalar_lea.vmem (%p69_p3), %s1794_s1, %s1277_s22  ;;  %s1490_s27 = scalar_lea.vmem (%p69_p3), [#allocation3], %s1011_s23 }
   0xf   : > { %v179_v0 = vld [vmem:[%s1485_s26] sm:$0xff] (%p69_p3)  ;;  %v181_v1 = vld [vmem:[%s1485_s26 + $0x8] sm:$0xff] (%p69_p3)  ;;  %v183_v2 = vld [vmem:[%s1485_s26 + $0x70] sm:$0xff] (%p69_p3) }
  0x10   : > { %180 = vst [vmem:[%s1490_s27] sm:$0xff] (%p69_p3), %v179_v0  ;;  %v185_v3 = vld [vmem:[%s1485_s26 + $0x78] sm:$0xff] (%p69_p3)  ;;  %v187_v4 = vld [vmem:[%s1485_s26 + $0xe0] sm:$0xff] (%p69_p3)  ;;  %v189_v5 = vld [vmem:[%s1485_s26 + $0xe8] sm:$0xff] (%p69_p3) }
  0x11   : > { %182 = vst [vmem:[%s1490_s27 + $0x8] sm:$0xff] %v181_v1  ;;  %v191_v6 = vld [vmem:[%s1485_s26 + $0x150] sm:$0xff]  ;;  %v193_v7 = vld [vmem:[%s1485_s26 + $0x158] sm:$0xff]  ;;  %v195_v8 = vld [vmem:[%s1485_s26 + $0x1c0] sm:$0xff] }
  0x12   : > { %184 = vst [vmem:[%s1490_s27 + $0x10] sm:$0xff] %v183_v2  ;;  %v197_v9 = vld [vmem:[%s1485_s26 + $0x1c8] sm:$0xff]  ;;  %v199_v10 = vld [vmem:[%s1485_s26 + $0x230] sm:$0xff]  ;;  %v201_v11 = vld [vmem:[%s1485_s26 + $0x238] sm:$0xff] }
  0x13   : > { %186 = vst [vmem:[%s1490_s27 + $0x18] sm:$0xff] %v185_v3  ;;  %v203_v12 = vld [vmem:[%s1485_s26 + $0x2a0] sm:$0xff]  ;;  %v205_v13 = vld [vmem:[%s1485_s26 + $0x2a8] sm:$0xff]  ;;  %v207_v14 = vld [vmem:[%s1485_s26 + $0x310] sm:$0xff] }
  0x14   : > { %188 = vst [vmem:[%s1490_s27 + $0x20] sm:$0xff] %v187_v4  ;;  %v209_v15 = vld [vmem:[%s1485_s26 + $0x318] sm:$0xff]  ;;  %v211_v16 = vld [vmem:[%s1485_s26 + $0x380] sm:$0xff]  ;;  %v213_v17 = vld [vmem:[%s1485_s26 + $0x388] sm:$0xff] }
  0x15   : > { %190 = vst [vmem:[%s1490_s27 + $0x28] sm:$0xff] %v189_v5  ;;  %v215_v18 = vld [vmem:[%s1485_s26 + $0x3f0] sm:$0xff]  ;;  %v217_v19 = vld [vmem:[%s1485_s26 + $0x3f8] sm:$0xff]  ;;  %v219_v20 = vld [vmem:[%s1485_s26 + $0x460] sm:$0xff] }
  0x16   : > { %192 = vst [vmem:[%s1490_s27 + $0x30] sm:$0xff] %v191_v6  ;;  %v221_v21 = vld [vmem:[%s1485_s26 + $0x468] sm:$0xff]  ;;  %v223_v22 = vld [vmem:[%s1485_s26 + $0x4d0] sm:$0xff]  ;;  %v225_v23 = vld [vmem:[%s1485_s26 + $0x4d8] sm:$0xff] }
  0x17   : > { %194 = vst [vmem:[%s1490_s27 + $0x38] sm:$0xff] %v193_v7  ;;  %v227_v24 = vld [vmem:[%s1485_s26 + $0x540] sm:$0xff]  ;;  %v229_v25 = vld [vmem:[%s1485_s26 + $0x548] sm:$0xff]  ;;  %v231_v26 = vld [vmem:[%s1485_s26 + $0x5b0] sm:$0xff] }
  0x18   : > { %196 = vst [vmem:[%s1490_s27 + $0x40] sm:$0xff] %v195_v8  ;;  %v233_v27 = vld [vmem:[%s1485_s26 + $0x5b8] sm:$0xff]  ;;  %v235_v28 = vld [vmem:[%s1485_s26 + $0x620] sm:$0xff]  ;;  %v237_v29 = vld [vmem:[%s1485_s26 + $0x628] sm:$0xff] }
  0x19   : > { %198 = vst [vmem:[%s1490_s27 + $0x48] sm:$0xff] %v197_v9  ;;  %v239_v30 = vld [vmem:[%s1485_s26 + $0x690] sm:$0xff]  ;;  %v241_v31 = vld [vmem:[%s1485_s26 + $0x698] sm:$0xff]  ;;  %v243_v32 = vld [vmem:[%s1485_s26 + $0x700] sm:$0xff] }
  0x1a   : > { %200 = vst [vmem:[%s1490_s27 + $0x50] sm:$0xff] %v199_v10  ;;  %v245_v33 = vld [vmem:[%s1485_s26 + $0x708] sm:$0xff]  ;;  %v247_v34 = vld [vmem:[%s1485_s26 + $0x770] sm:$0xff]  ;;  %v249_v35 = vld [vmem:[%s1485_s26 + $0x778] sm:$0xff] }
  0x1b   : > { %202 = vst [vmem:[%s1490_s27 + $0x58] sm:$0xff] %v201_v11  ;;  %v251_v36 = vld [vmem:[%s1485_s26 + $0x7e0] sm:$0xff]  ;;  %v253_v37 = vld [vmem:[%s1485_s26 + $0x7e8] sm:$0xff]  ;;  %v255_v38 = vld [vmem:[%s1485_s26 + $0x850] sm:$0xff] }
  0x1c   : > { %204 = vst [vmem:[%s1490_s27 + $0x60] sm:$0xff] %v203_v12  ;;  %v257_v39 = vld [vmem:[%s1485_s26 + $0x858] sm:$0xff]  ;;  %v259_v40 = vld [vmem:[%s1485_s26 + $0x8c0] sm:$0xff]  ;;  %v261_v41 = vld [vmem:[%s1485_s26 + $0x8c8] sm:$0xff] }
  0x1d   : > { %206 = vst [vmem:[%s1490_s27 + $0x68] sm:$0xff] %v205_v13  ;;  %v263_v42 = vld [vmem:[%s1485_s26 + $0x930] sm:$0xff]  ;;  %v265_v43 = vld [vmem:[%s1485_s26 + $0x938] sm:$0xff]  ;;  %v267_v44 = vld [vmem:[%s1485_s26 + $0x9a0] sm:$0xff] }
  0x1e   : > { %208 = vst [vmem:[%s1490_s27 + $0x70] sm:$0xff] %v207_v14  ;;  %v269_v45 = vld [vmem:[%s1485_s26 + $0x9a8] sm:$0xff]  ;;  %v271_v46 = vld [vmem:[%s1485_s26 + $0xa10] sm:$0xff]  ;;  %v273_v47 = vld [vmem:[%s1485_s26 + $0xa18] sm:$0xff] }
  0x1f   : > { %210 = vst [vmem:[%s1490_s27 + $0x78] sm:$0xff] %v209_v15  ;;  %v275_v48 = vld [vmem:[%s1485_s26 + $0xa80] sm:$0xff]  ;;  %v277_v49 = vld [vmem:[%s1485_s26 + $0xa88] sm:$0xff]  ;;  %v279_v50 = vld [vmem:[%s1485_s26 + $0xaf0] sm:$0xff] }
  0x20   : > { %212 = vst [vmem:[%s1490_s27 + $0x80] sm:$0xff] %v211_v16  ;;  %v281_v51 = vld [vmem:[%s1485_s26 + $0xaf8] sm:$0xff]  ;;  %v283_v52 = vld [vmem:[%s1485_s26 + $0xb60] sm:$0xff]  ;;  %v285_v53 = vld [vmem:[%s1485_s26 + $0xb68] sm:$0xff] }
  0x21   : > { %214 = vst [vmem:[%s1490_s27 + $0x88] sm:$0xff] %v213_v17  ;;  %v287_v54 = vld [vmem:[%s1485_s26 + $0xbd0] sm:$0xff]  ;;  %v289_v55 = vld [vmem:[%s1485_s26 + $0xbd8] sm:$0xff]  ;;  %v291_v56 = vld [vmem:[%s1485_s26 + $0xc40] sm:$0xff] }
  0x22   : > { %216 = vst [vmem:[%s1490_s27 + $0x90] sm:$0xff] %v215_v18  ;;  %v293_v57 = vld [vmem:[%s1485_s26 + $0xc48] sm:$0xff]  ;;  %v295_v58 = vld [vmem:[%s1485_s26 + $0xcb0] sm:$0xff]  ;;  %v297_v59 = vld [vmem:[%s1485_s26 + $0xcb8] sm:$0xff] }
  0x23   : > { %218 = vst [vmem:[%s1490_s27 + $0x98] sm:$0xff] %v217_v19  ;;  %v299_v60 = vld [vmem:[%s1485_s26 + $0xd20] sm:$0xff]  ;;  %v301_v61 = vld [vmem:[%s1485_s26 + $0xd28] sm:$0xff]  ;;  %v303_v62 = vld [vmem:[%s1485_s26 + $0xd90] sm:$0xff] }
  0x24   : > { %220 = vst [vmem:[%s1490_s27 + $0xa0] sm:$0xff] %v219_v20  ;;  %v305_v63 = vld [vmem:[%s1485_s26 + $0xd98] sm:$0xff] }
  0x25   : > { %222 = vst [vmem:[%s1490_s27 + $0xa8] sm:$0xff] %v221_v21 }
  0x26   : > { %224 = vst [vmem:[%s1490_s27 + $0xb0] sm:$0xff] %v223_v22 }
  0x27   : > { %226 = vst [vmem:[%s1490_s27 + $0xb8] sm:$0xff] %v225_v23 }
  0x28   : > { %228 = vst [vmem:[%s1490_s27 + $0xc0] sm:$0xff] %v227_v24 }
  0x29   : > { %230 = vst [vmem:[%s1490_s27 + $0xc8] sm:$0xff] %v229_v25 }
  0x2a   : > { %232 = vst [vmem:[%s1490_s27 + $0xd0] sm:$0xff] %v231_v26 }
  0x2b   : > { %234 = vst [vmem:[%s1490_s27 + $0xd8] sm:$0xff] %v233_v27 }
  0x2c   : > { %236 = vst [vmem:[%s1490_s27 + $0xe0] sm:$0xff] %v235_v28 }
  0x2d   : > { %238 = vst [vmem:[%s1490_s27 + $0xe8] sm:$0xff] %v237_v29 }
  0x2e   : > { %240 = vst [vmem:[%s1490_s27 + $0xf0] sm:$0xff] %v239_v30 }
  0x2f   : > { %242 = vst [vmem:[%s1490_s27 + $0xf8] sm:$0xff] %v241_v31 }
  0x30   : > { %244 = vst [vmem:[%s1490_s27 + $0x100] sm:$0xff] %v243_v32 }
  0x31   : > { %246 = vst [vmem:[%s1490_s27 + $0x108] sm:$0xff] %v245_v33 }
  0x32   : > { %248 = vst [vmem:[%s1490_s27 + $0x110] sm:$0xff] %v247_v34 }
  0x33   : > { %250 = vst [vmem:[%s1490_s27 + $0x118] sm:$0xff] %v249_v35 }
  0x34   : > { %252 = vst [vmem:[%s1490_s27 + $0x120] sm:$0xff] %v251_v36 }
  0x35   : > { %254 = vst [vmem:[%s1490_s27 + $0x128] sm:$0xff] %v253_v37 }
  0x36   : > { %256 = vst [vmem:[%s1490_s27 + $0x130] sm:$0xff] %v255_v38 }
  0x37   : > { %258 = vst [vmem:[%s1490_s27 + $0x138] sm:$0xff] %v257_v39 }
  0x38   : > { %260 = vst [vmem:[%s1490_s27 + $0x140] sm:$0xff] %v259_v40 }
  0x39   : > { %262 = vst [vmem:[%s1490_s27 + $0x148] sm:$0xff] %v261_v41 }
  0x3a   : > { %264 = vst [vmem:[%s1490_s27 + $0x150] sm:$0xff] %v263_v42 }
  0x3b   : > { %266 = vst [vmem:[%s1490_s27 + $0x158] sm:$0xff] %v265_v43 }
  0x3c   : > { %268 = vst [vmem:[%s1490_s27 + $0x160] sm:$0xff] %v267_v44 }
  0x3d   : > { %270 = vst [vmem:[%s1490_s27 + $0x168] sm:$0xff] %v269_v45 }
  0x3e   : > { %272 = vst [vmem:[%s1490_s27 + $0x170] sm:$0xff] %v271_v46 }
  0x3f   : > { %274 = vst [vmem:[%s1490_s27 + $0x178] sm:$0xff] %v273_v47 }
  0x40   : > { %276 = vst [vmem:[%s1490_s27 + $0x180] sm:$0xff] %v275_v48 }
  0x41   : > { %278 = vst [vmem:[%s1490_s27 + $0x188] sm:$0xff] %v277_v49 }
  0x42   : > { %280 = vst [vmem:[%s1490_s27 + $0x190] sm:$0xff] %v279_v50 }
  0x43   : > { %282 = vst [vmem:[%s1490_s27 + $0x198] sm:$0xff] %v281_v51 }
  0x44   : > { %284 = vst [vmem:[%s1490_s27 + $0x1a0] sm:$0xff] %v283_v52 }
  0x45   : > { %286 = vst [vmem:[%s1490_s27 + $0x1a8] sm:$0xff] %v285_v53 }
  0x46   : > { %288 = vst [vmem:[%s1490_s27 + $0x1b0] sm:$0xff] %v287_v54 }
  0x47   : > { %290 = vst [vmem:[%s1490_s27 + $0x1b8] sm:$0xff] %v289_v55 }
  0x48   : > { %292 = vst [vmem:[%s1490_s27 + $0x1c0] sm:$0xff] %v291_v56 }
  0x49   : > { %294 = vst [vmem:[%s1490_s27 + $0x1c8] sm:$0xff] %v293_v57 }
  0x4a   : > { %296 = vst [vmem:[%s1490_s27 + $0x1d0] sm:$0xff] %v295_v58 }
  0x4b   : > { %298 = vst [vmem:[%s1490_s27 + $0x1d8] sm:$0xff] %v297_v59 }
  0x4c   : > { %300 = vst [vmem:[%s1490_s27 + $0x1e0] sm:$0xff] %v299_v60 }
  0x4d   : > { %302 = vst [vmem:[%s1490_s27 + $0x1e8] sm:$0xff] %v301_v61 }
  0x4e   : > { %304 = vst [vmem:[%s1490_s27 + $0x1f0] sm:$0xff] %v303_v62 }
  0x4f   : > { %306 = vst [vmem:[%s1490_s27 + $0x1f8] sm:$0xff] %v305_v63 }
  0x50 PF: > { %p1014_p6 = scmp.ge.s32.totalorder %s1420_s16, 1  ;;  %p319_p7 = scmp.lt.s32.totalorder %s1420_s16, 8 }
  0x52   : > { %p320_p8 = pnand %p1014_p6, %p319_p7 }
  0x53   : > { %s326_s28 = sand.u32 (!%p320_p8), 1, %s1404_s12   ;;  %s1016_s6 = sshll.u32 (!%p320_p8), %s1412_s14, 2 }
  0x54   : > { %323 = sbr.rel (%p320_p8) target bundleno = 298 (0x12a), region = 51  ;;  %s1015_s29 = sshll.u32 (!%p320_p8), %s326_s28, 9 }
  0x55   : > { %s1620_s30 = scalar_lea.vmem (!%p320_p8), [#allocation3], %s1015_s29  ;;  %p365_p9 = scmp.lt.s32.totalorder (!%p320_p8), %s1016_s6, 27 }
  0x59   : > { %v1133_v0 = vld [vmem:[%s1620_s30 + $0xe0] sm:$0xf]  ;;  %v1308_v1 = vld [vmem:[%s1620_s30 + $0xec] sm:$0xf0]  ;;  %v1306_v5 = vld [vmem:[%s1620_s30 + $0xe4] sm:$0xf] }
  0x5a   : > { %v1261_v2 = vld [vmem:[%s1620_s30 + $0x1e0] sm:$0xf]  ;;  %v1134_v3 = vor.u32 %v1308_v1, %v1133_v0  ;;  %v1340_v4 = vld [vmem:[%s1620_s30 + $0x1ec] sm:$0xf0]  ;;  %v1135_v6 = vld [vmem:[%s1620_s30 + $0xf0] sm:$0xf0] }
  0x5b   : > { %v1262_v7 = vor.u32 %v1340_v4, %v1261_v2  ;;  %v1138_v8 = vor.u32 %v1306_v5, %v1135_v6  ;;  %v1338_v9 = vld [vmem:[%s1620_s30 + $0x1e4] sm:$0xf]  ;;  %v1263_v10 = vld [vmem:[%s1620_s30 + $0x1f0] sm:$0xf0]  ;;  %v1117_v11 = vld [vmem:[%s1620_s30 + $0xc0] sm:$0xf] }
  0x5c   : > { %772 = vmatpush.bf16.msra.mxu0 %v1134_v3  ;;  %v1266_v12 = vor.u32 %v1338_v9, %v1263_v10  ;;  %v1304_v13 = vld [vmem:[%s1620_s30 + $0xcc] sm:$0xf0]  ;;  %v1245_v14 = vld [vmem:[%s1620_s30 + $0x1c0] sm:$0xf]  ;;  %v1302_v18 = vld [vmem:[%s1620_s30 + $0xc4] sm:$0xf] }
  0x5d   : > { %v1336_v15 = vld [vmem:[%s1620_s30 + $0x1cc] sm:$0xf0]  ;;  %785 = vmatpush.bf16.msra.mxu1 %v1262_v7  ;;  %798 = vmatpush.bf16.msra.mxu2 %v1138_v8  ;;  %v1118_v16 = vor.u32 %v1304_v13, %v1117_v11  ;;  %v1119_v19 = vld [vmem:[%s1620_s30 + $0xd0] sm:$0xf0]  ;;  %v1334_v20 = vld [vmem:[%s1620_s30 + $0x1c4] sm:$0xf] }
  0x5e   : > { %v1246_v17 = vor.u32 %v1336_v15, %v1245_v14  ;;  %811 = vmatpush.bf16.msra.mxu3 %v1266_v12  ;;  %v1122_v21 = vor.u32 %v1302_v18, %v1119_v19  ;;  %v1247_v22 = vld [vmem:[%s1620_s30 + $0x1d0] sm:$0xf0]  ;;  %v1101_v23 = vld [vmem:[%s1620_s30 + $0xa0] sm:$0xf]  ;;  %v1300_v24 = vld [vmem:[%s1620_s30 + $0xac] sm:$0xf0] }
  0x5f   : > { %v1250_v25 = vor.u32 %v1334_v20, %v1247_v22  ;;  %v1229_v26 = vld [vmem:[%s1620_s30 + $0x1a0] sm:$0xf]  ;;  %v1332_v27 = vld [vmem:[%s1620_s30 + $0x1ac] sm:$0xf0]  ;;  %v1298_v28 = vld [vmem:[%s1620_s30 + $0xa4] sm:$0xf]  ;;  %v1102_v29 = vor.u32 %v1300_v24, %v1101_v23 }
  0x60   : > { %773 = vmatpush.bf16.msra.mxu0 %v1118_v16  ;;  %v1103_v30 = vld [vmem:[%s1620_s30 + $0xb0] sm:$0xf0]  ;;  %v1330_v31 = vld [vmem:[%s1620_s30 + $0x1a4] sm:$0xf]  ;;  %v1230_v33 = vor.u32 %v1332_v27, %v1229_v26  ;;  %v1085_v35 = vld [vmem:[%s1620_s30 + $0x80] sm:$0xf] }
  0x61   : > { %v1231_v32 = vld [vmem:[%s1620_s30 + $0x1b0] sm:$0xf0]  ;;  %786 = vmatpush.bf16.msra.mxu1 %v1246_v17  ;;  %799 = vmatpush.bf16.msra.mxu2 %v1122_v21  ;;  %v1106_v34 = vor.u32 %v1298_v28, %v1103_v30  ;;  %v1296_v36 = vld [vmem:[%s1620_s30 + $0x8c] sm:$0xf0]  ;;  %v1213_v37 = vld [vmem:[%s1620_s30 + $0x180] sm:$0xf] }
  0x62   : > { %812 = vmatpush.bf16.msra.mxu3 %v1250_v25  ;;  %v1234_v38 = vor.u32 %v1330_v31, %v1231_v32  ;;  %v1328_v39 = vld [vmem:[%s1620_s30 + $0x18c] sm:$0xf0]  ;;  %v1294_v40 = vld [vmem:[%s1620_s30 + $0x84] sm:$0xf]  ;;  %v1087_v41 = vld [vmem:[%s1620_s30 + $0x90] sm:$0xf0]  ;;  %v1086_v44 = vor.u32 %v1296_v36, %v1085_v35 }
  0x63   : > { %v1326_v42 = vld [vmem:[%s1620_s30 + $0x184] sm:$0xf]  ;;  %v1215_v43 = vld [vmem:[%s1620_s30 + $0x190] sm:$0xf0]  ;;  %v1214_v45 = vor.u32 %v1328_v39, %v1213_v37  ;;  %v1090_v46 = vor.u32 %v1294_v40, %v1087_v41  ;;  %v1069_v47 = vld [vmem:[%s1620_s30 + $0x60] sm:$0xf] }
  0x64   : > { %774 = vmatpush.bf16.msra.mxu0 %v1102_v29  ;;  %v1292_v48 = vld [vmem:[%s1620_s30 + $0x6c] sm:$0xf0]  ;;  %v1197_v49 = vld [vmem:[%s1620_s30 + $0x160] sm:$0xf]  ;;  %v1218_v50 = vor.u32 %v1326_v42, %v1215_v43  ;;  %v1290_v52 = vld [vmem:[%s1620_s30 + $0x64] sm:$0xf] }
  0x65   : > { %787 = vmatpush.bf16.msra.mxu1 %v1230_v33  ;;  %800 = vmatpush.bf16.msra.mxu2 %v1106_v34  ;;  %v1324_v51 = vld [vmem:[%s1620_s30 + $0x16c] sm:$0xf0]  ;;  %v1071_v53 = vld [vmem:[%s1620_s30 + $0x70] sm:$0xf0]  ;;  %v1322_v54 = vld [vmem:[%s1620_s30 + $0x164] sm:$0xf]  ;;  %v1070_v56 = vor.u32 %v1292_v48, %v1069_v47 }
  0x66   : > { %813 = vmatpush.bf16.msra.mxu3 %v1234_v38  ;;  %v1199_v55 = vld [vmem:[%s1620_s30 + $0x170] sm:$0xf0]  ;;  %v1198_v57 = vor.u32 %v1324_v51, %v1197_v49  ;;  %v1074_v58 = vor.u32 %v1290_v52, %v1071_v53  ;;  %v1053_v59 = vld [vmem:[%s1620_s30 + $0x40] sm:$0xf]  ;;  %v1288_v60 = vld [vmem:[%s1620_s30 + $0x4c] sm:$0xf0] }
  0x67   : > { %v1181_v61 = vld [vmem:[%s1620_s30 + $0x140] sm:$0xf]  ;;  %v1202_v62 = vor.u32 %v1322_v54, %v1199_v55  ;;  %v1320_v63 = vld [vmem:[%s1620_s30 + $0x14c] sm:$0xf0]  ;;  %v1286_v0 = vld [vmem:[%s1620_s30 + $0x44] sm:$0xf]  ;;  %v1054_v4 = vor.u32 %v1288_v60, %v1053_v59 }
  0x68   : > { %775 = vmatpush.bf16.msra.mxu0 %v1086_v44  ;;  %v1055_v1 = vld [vmem:[%s1620_s30 + $0x50] sm:$0xf0]  ;;  %v1318_v2 = vld [vmem:[%s1620_s30 + $0x144] sm:$0xf]  ;;  %v1182_v5 = vor.u32 %v1320_v63, %v1181_v61  ;;  %v1037_v7 = vld [vmem:[%s1620_s30 + $0x20] sm:$0xf] }
  0x69   : > { %788 = vmatpush.bf16.msra.mxu1 %v1214_v45  ;;  %801 = vmatpush.bf16.msra.mxu2 %v1090_v46  ;;  %v1183_v3 = vld [vmem:[%s1620_s30 + $0x150] sm:$0xf0]  ;;  %v1058_v6 = vor.u32 %v1286_v0, %v1055_v1  ;;  %v1284_v8 = vld [vmem:[%s1620_s30 + $0x2c] sm:$0xf0]  ;;  %v1165_v9 = vld [vmem:[%s1620_s30 + $0x120] sm:$0xf] }
  0x6a   : > { %814 = vmatpush.bf16.msra.mxu3 %v1218_v50  ;;  %v1186_v10 = vor.u32 %v1318_v2, %v1183_v3  ;;  %v1316_v11 = vld [vmem:[%s1620_s30 + $0x12c] sm:$0xf0]  ;;  %v1282_v12 = vld [vmem:[%s1620_s30 + $0x24] sm:$0xf]  ;;  %v1039_v13 = vld [vmem:[%s1620_s30 + $0x30] sm:$0xf0]  ;;  %v1038_v17 = vor.u32 %v1284_v8, %v1037_v7 }
  0x6b   : > { %v1314_v14 = vld [vmem:[%s1620_s30 + $0x124] sm:$0xf]  ;;  %v1167_v15 = vld [vmem:[%s1620_s30 + $0x130] sm:$0xf0]  ;;  %v1021_v16 = vld [vmem:[%s1620_s30] sm:$0xf]  ;;  %v1166_v21 = vor.u32 %v1316_v11, %v1165_v9  ;;  %v1042_v22 = vor.u32 %v1282_v12, %v1039_v13 }
  0x6c   : > { %776 = vmatpush.bf16.msra.mxu0 %v1070_v56  ;;  %v1280_v18 = vld [vmem:[%s1620_s30 + $0xc] sm:$0xf0]  ;;  %v1149_v19 = vld [vmem:[%s1620_s30 + $0x100] sm:$0xf]  ;;  %v1278_v23 = vld [vmem:[%s1620_s30 + $0x4] sm:$0xf]  ;;  %v1170_v26 = vor.u32 %v1314_v14, %v1167_v15 }
  0x6d   : > { %789 = vmatpush.bf16.msra.mxu1 %v1198_v57  ;;  %802 = vmatpush.bf16.msra.mxu2 %v1074_v58  ;;  %v1312_v20 = vld [vmem:[%s1620_s30 + $0x10c] sm:$0xf0]  ;;  %v1023_v24 = vld [vmem:[%s1620_s30 + $0x10] sm:$0xf0]  ;;  %v1310_v25 = vld [vmem:[%s1620_s30 + $0x104] sm:$0xf]  ;;  %v1022_v33 = vor.u32 %v1280_v18, %v1021_v16 }
  0x6e   : > { %815 = vmatpush.bf16.msra.mxu3 %v1202_v62  ;;  %v1151_v27 = vld [vmem:[%s1620_s30 + $0x110] sm:$0xf0]  ;;  %v1141_v28 = vld [vmem:[%s1620_s30 + $0xe8] sm:$0xf]  ;;  %v1309_v29 = vld [vmem:[%s1620_s30 + $0xf4] sm:$0xf0]  ;;  %v1150_v36 = vor.u32 %v1312_v20, %v1149_v19  ;;  %v1026_v37 = vor.u32 %v1278_v23, %v1023_v24 }
  0x6f   : > { %v1269_v30 = vld [vmem:[%s1620_s30 + $0x1e8] sm:$0xf]  ;;  %v1341_v31 = vld [vmem:[%s1620_s30 + $0x1f4] sm:$0xf0]  ;;  %v1307_v34 = vld [vmem:[%s1620_s30 + $0xec] sm:$0xf]  ;;  %v1154_v40 = vor.u32 %v1310_v25, %v1151_v27  ;;  %v1142_v41 = vor.u32 %v1309_v29, %v1141_v28 }
  0x70   : > { %777 = vmatpush.bf16.msra.mxu0 %v1054_v4  ;;  %v381_v32 = vld [vmem:[%s1793_s0] sm:$0x3]  ;;  %v1143_v35 = vld [vmem:[%s1620_s30 + $0xf8] sm:$0xf0]  ;;  %v1339_v38 = vld [vmem:[%s1620_s30 + $0x1ec] sm:$0xf]  ;;  %v1270_v42 = vor.u32 %v1341_v31, %v1269_v30 }
  0x71   : > { %790 = vmatpush.bf16.msra.mxu1 %v1182_v5  ;;  %803 = vmatpush.bf16.msra.mxu2 %v1058_v6  ;;  %447 = vst [vmem:[#allocation1] ss:$9 sm:$0xff] %v381_v32  ;;  %v1271_v39 = vld [vmem:[%s1620_s30 + $0x1f8] sm:$0xf0]  ;;  %v1146_v43 = vor.u32 %v1307_v34, %v1143_v35  ;;  %v1125_v44 = vld [vmem:[%s1620_s30 + $0xc8] sm:$0xf] }
  0x72   : > { %816 = vmatpush.bf16.msra.mxu3 %v1186_v10  ;;  %v1305_v45 = vld [vmem:[%s1620_s30 + $0xd4] sm:$0xf0]  ;;  %v1253_v46 = vld [vmem:[%s1620_s30 + $0x1c8] sm:$0xf]  ;;  %v1274_v47 = vor.u32 %v1339_v38, %v1271_v39  ;;  %v1303_v49 = vld [vmem:[%s1620_s30 + $0xcc] sm:$0xf] }
  0x73   : > { %v1337_v48 = vld [vmem:[%s1620_s30 + $0x1d4] sm:$0xf0]  ;;  %v1127_v50 = vld [vmem:[%s1620_s30 + $0xd8] sm:$0xf0]  ;;  %v1335_v51 = vld [vmem:[%s1620_s30 + $0x1cc] sm:$0xf]  ;;  %v1126_v53 = vor.u32 %v1305_v45, %v1125_v44 }
  0x74   : > { %778 = vmatpush.bf16.msra.mxu0 %v1038_v17  ;;  %v1255_v52 = vld [vmem:[%s1620_s30 + $0x1d8] sm:$0xf0]  ;;  %v1109_v54 = vld [vmem:[%s1620_s30 + $0xa8] sm:$0xf]  ;;  %v1301_v55 = vld [vmem:[%s1620_s30 + $0xb4] sm:$0xf0]  ;;  %v1254_v56 = vor.u32 %v1337_v48, %v1253_v46  ;;  %v1130_v57 = vor.u32 %v1303_v49, %v1127_v50 }
  0x75   : > { %791 = vmatpush.bf16.msra.mxu1 %v1166_v21  ;;  %804 = vmatpush.bf16.msra.mxu2 %v1042_v22  ;;  %v1237_v60 = vld [vmem:[%s1620_s30 + $0x1a8] sm:$0xf]  ;;  %v1258_v61 = vor.u32 %v1335_v51, %v1255_v52  ;;  %v1333_v62 = vld [vmem:[%s1620_s30 + $0x1b4] sm:$0xf0]  ;;  %v1299_v63 = vld [vmem:[%s1620_s30 + $0xac] sm:$0xf]  ;;  %v1110_v3 = vor.u32 %v1301_v55, %v1109_v54 }
  0x76   : > { %817 = vmatpush.bf16.msra.mxu3 %v1170_v26  ;;  %v1111_v0 = vld [vmem:[%s1620_s30 + $0xb8] sm:$0xf0]  ;;  %v1331_v1 = vld [vmem:[%s1620_s30 + $0x1ac] sm:$0xf]  ;;  %v1238_v4 = vor.u32 %v1333_v62, %v1237_v60  ;;  %v1093_v6 = vld [vmem:[%s1620_s30 + $0x88] sm:$0xf] }
  0x77   : > { %v1239_v2 = vld [vmem:[%s1620_s30 + $0x1b8] sm:$0xf0]  ;;  %v1114_v5 = vor.u32 %v1299_v63, %v1111_v0  ;;  %v1297_v7 = vld [vmem:[%s1620_s30 + $0x94] sm:$0xf0]  ;;  %v1221_v8 = vld [vmem:[%s1620_s30 + $0x188] sm:$0xf] }
  0x78   : > { %779 = vmatpush.bf16.msra.mxu0 %v1022_v33  ;;  %v1707_v58 = vld [vmem:[#allocation1] sm:$0xff]  ;;  %v1709_v59 = vld [vmem:[#allocation1 + $0x9] sm:$0xff]  ;;  %v1242_v9 = vor.u32 %v1331_v1, %v1239_v2  ;;  %v1295_v11 = vld [vmem:[%s1620_s30 + $0x8c] sm:$0xf]  ;;  %v1094_v15 = vor.u32 %v1297_v7, %v1093_v6  ;;  %s1804_s6 = smov (!%p365_p9, %s1016_s6), 27  ;;  %vm885_vm0 = vcmask 1045508  }
  0x79   : > { %792 = vmatpush.bf16.msra.mxu1 %v1150_v36  ;;  %805 = vmatpush.bf16.msra.mxu2 %v1026_v37  ;;  %v1329_v10 = vld [vmem:[%s1620_s30 + $0x194] sm:$0xf0]  ;;  %v1095_v12 = vld [vmem:[%s1620_s30 + $0x98] sm:$0xf0]  ;;  %v1327_v13 = vld [vmem:[%s1620_s30 + $0x18c] sm:$0xf]  ;;  %s367_s9 = scalar_lea.vmem %s1795_s2, %s1804_s6 }
  0x7a   : > { %818 = vmatpush.bf16.msra.mxu3 %v1154_v40  ;;  %v1223_v14 = vld [vmem:[%s1620_s30 + $0x198] sm:$0xf0]  ;;  %v1222_v16 = vor.u32 %v1329_v10, %v1221_v8  ;;  %v1098_v17 = vor.u32 %v1295_v11, %v1095_v12  ;;  %v1077_v18 = vld [vmem:[%s1620_s30 + $0x68] sm:$0xf]  ;;  %v1293_v19 = vld [vmem:[%s1620_s30 + $0x74] sm:$0xf0] }
  0x7b   : > { %780 = vmatmul.bf16.vlgmr.msra.gmra.mxu0 %v1707_v58  ;;  %v1205_v20 = vld [vmem:[%s1620_s30 + $0x168] sm:$0xf]  ;;  %v1226_v21 = vor.u32 %v1327_v13, %v1223_v14  ;;  %v1325_v22 = vld [vmem:[%s1620_s30 + $0x174] sm:$0xf0]  ;;  %v1291_v23 = vld [vmem:[%s1620_s30 + $0x6c] sm:$0xf]  ;;  %v1078_v27 = vor.u32 %v1293_v19, %v1077_v18 }
  0x7c   : > { %824 = vmatpush.bf16.msrb.mxu0 %v1142_v41  ;;  %806 = vmatmul.bf16.vlgmr.msra.gmra.mxu2 %v1707_v58  ;;  %v1079_v24 = vld [vmem:[%s1620_s30 + $0x78] sm:$0xf0]  ;;  %v1323_v25 = vld [vmem:[%s1620_s30 + $0x16c] sm:$0xf]  ;;  %v1206_v28 = vor.u32 %v1325_v22, %v1205_v20  ;;  %v1061_v30 = vld [vmem:[%s1620_s30 + $0x48] sm:$0xf] }
  0x7d   : > { %837 = vmatpush.bf16.msrb.mxu1 %v1270_v42  ;;  %850 = vmatpush.bf16.msrb.mxu2 %v1146_v43  ;;  %v1207_v26 = vld [vmem:[%s1620_s30 + $0x178] sm:$0xf0]  ;;  %v1082_v29 = vor.u32 %v1291_v23, %v1079_v24  ;;  %v1289_v31 = vld [vmem:[%s1620_s30 + $0x54] sm:$0xf0]  ;;  %v1189_v32 = vld [vmem:[%s1620_s30 + $0x148] sm:$0xf] }
  0x7e   : > { %863 = vmatpush.bf16.msrb.mxu3 %v1274_v47  ;;  %793 = vmatmul.bf16.vlgmr.msra.gmra.mxu1 %v1709_v59  ;;  %v1210_v33 = vor.u32 %v1323_v25, %v1207_v26  ;;  %v1321_v34 = vld [vmem:[%s1620_s30 + $0x154] sm:$0xf0]  ;;  %v1287_v35 = vld [vmem:[%s1620_s30 + $0x4c] sm:$0xf]  ;;  %v1063_v36 = vld [vmem:[%s1620_s30 + $0x58] sm:$0xf0]  ;;  %v1062_v39 = vor.u32 %v1289_v31, %v1061_v30 }
  0x7f   : > { %819 = vmatmul.bf16.vlgmr.msra.gmra.mxu3 %v1709_v59  ;;  %v1319_v37 = vld [vmem:[%s1620_s30 + $0x14c] sm:$0xf]  ;;  %v1191_v38 = vld [vmem:[%s1620_s30 + $0x158] sm:$0xf0]  ;;  %v1190_v40 = vor.u32 %v1321_v34, %v1189_v32  ;;  %v1066_v41 = vor.u32 %v1287_v35, %v1063_v36  ;;  %v1045_v42 = vld [vmem:[%s1620_s30 + $0x28] sm:$0xf] }
  0x80   : > { %825 = vmatpush.bf16.msrb.mxu0 %v1126_v53  ;;  %v1285_v43 = vld [vmem:[%s1620_s30 + $0x34] sm:$0xf0]  ;;  %v1173_v44 = vld [vmem:[%s1620_s30 + $0x128] sm:$0xf]  ;;  %v1194_v45 = vor.u32 %v1319_v37, %v1191_v38  ;;  %v1283_v47 = vld [vmem:[%s1620_s30 + $0x2c] sm:$0xf] }
  0x81   : > { %838 = vmatpush.bf16.msrb.mxu1 %v1254_v56  ;;  %851 = vmatpush.bf16.msrb.mxu2 %v1130_v57  ;;  %v1317_v46 = vld [vmem:[%s1620_s30 + $0x134] sm:$0xf0]  ;;  %v1047_v48 = vld [vmem:[%s1620_s30 + $0x38] sm:$0xf0]  ;;  %v1315_v49 = vld [vmem:[%s1620_s30 + $0x12c] sm:$0xf]  ;;  %v1046_v51 = vor.u32 %v1285_v43, %v1045_v42 }
  0x82   : > { %864 = vmatpush.bf16.msrb.mxu3 %v1258_v61  ;;  %v1175_v50 = vld [vmem:[%s1620_s30 + $0x138] sm:$0xf0]  ;;  %v1174_v52 = vor.u32 %v1317_v46, %v1173_v44  ;;  %v1050_v53 = vor.u32 %v1283_v47, %v1047_v48  ;;  %v1029_v54 = vld [vmem:[%s1620_s30 + $0x8] sm:$0xf]  ;;  %v1281_v55 = vld [vmem:[%s1620_s30 + $0x14] sm:$0xf0] }
  0x83   : > { %v1157_v56 = vld [vmem:[%s1620_s30 + $0x108] sm:$0xf]  ;;  %v1178_v57 = vor.u32 %v1315_v49, %v1175_v50  ;;  %v1313_v60 = vld [vmem:[%s1620_s30 + $0x114] sm:$0xf0]  ;;  %v1279_v61 = vld [vmem:[%s1620_s30 + $0xc] sm:$0xf]  ;;  %v1030_v1 = vor.u32 %v1281_v55, %v1029_v54 }
  0x84   : > { %826 = vmatpush.bf16.msrb.mxu0 %v1110_v3  ;;  %v1031_v62 = vld [vmem:[%s1620_s30 + $0x18] sm:$0xf0]  ;;  %v1311_v63 = vld [vmem:[%s1620_s30 + $0x10c] sm:$0xf]  ;;  %v1158_v2 = vor.u32 %v1313_v60, %v1157_v56  ;;  %vm883_vm1 = vcmask 1041408   ;;  %vm887_vm2 = vcmask 1043456  }
  0x85   : > { %839 = vmatpush.bf16.msrb.mxu1 %v1238_v4  ;;  %852 = vmatpush.bf16.msrb.mxu2 %v1114_v5  ;;  %v1159_v0 = vld [vmem:[%s1620_s30 + $0x118] sm:$0xf0]  ;;  %v1034_v3 = vor.u32 %v1279_v61, %v1031_v62  ;;  %s1018_s10 = sshll.u32 %s1804_s6, 1 }
  0x86   : > { %865 = vmatpush.bf16.msrb.mxu3 %v1242_v9  ;;  %v1162_v4 = vor.u32 %v1311_v63, %v1159_v0  ;;  %s373_s14 = scalar_lea.vmem %s1796_s3, %s1018_s10 }
  0x88   : > { %827 = vmatpush.bf16.msrb.mxu0 %v1094_v15 }
  0x89   : > { %840 = vmatpush.bf16.msrb.mxu1 %v1222_v16  ;;  %853 = vmatpush.bf16.msrb.mxu2 %v1098_v17 }
  0x8a   : > { %866 = vmatpush.bf16.msrb.mxu3 %v1226_v21 }
  0x8c   : > { %828 = vmatpush.bf16.msrb.mxu0 %v1078_v27 }
  0x8d   : > { %841 = vmatpush.bf16.msrb.mxu1 %v1206_v28  ;;  %854 = vmatpush.bf16.msrb.mxu2 %v1082_v29 }
  0x8e   : > { %867 = vmatpush.bf16.msrb.mxu3 %v1210_v33 }
  0x90   : > { %829 = vmatpush.bf16.msrb.mxu0 %v1062_v39 }
  0x91   : > { %842 = vmatpush.bf16.msrb.mxu1 %v1190_v40  ;;  %855 = vmatpush.bf16.msrb.mxu2 %v1066_v41 }
  0x92   : > { %868 = vmatpush.bf16.msrb.mxu3 %v1194_v45 }
  0x94   : > { %830 = vmatpush.bf16.msrb.mxu0 %v1046_v51 }
  0x95   : > { %843 = vmatpush.bf16.msrb.mxu1 %v1174_v52  ;;  %856 = vmatpush.bf16.msrb.mxu2 %v1050_v53 }
  0x96   : > { %869 = vmatpush.bf16.msrb.mxu3 %v1178_v57 }
  0x98   : > { %831 = vmatpush.bf16.msrb.mxu0 %v1030_v1 }
  0x99   : > { %844 = vmatpush.bf16.msrb.mxu1 %v1158_v2  ;;  %857 = vmatpush.bf16.msrb.mxu2 %v1034_v3 }
  0x9a   : > { %870 = vmatpush.bf16.msrb.mxu3 %v1162_v4 }
  0x9b   : > { %832 = vmatmul.bf16.vlgmr.msrb.gmra.mxu0 %v1707_v58 }
  0x9c   : > { %845 = vmatmul.bf16.vlgmr.msrb.gmra.mxu1 %v1709_v59  ;;  %858 = vmatmul.bf16.vlgmr.msrb.gmra.mxu2 %v1707_v58  ;;  %v896_v58 = vld [vmem:[%s367_s9] sm:$0xf] }
  0x9d   : > { %871 = vmatmul.bf16.vlgmr.msrb.gmra.mxu3 %v1709_v59  ;;  %v899_v13 = vperm.slane %v896_v58, 1  ;;  %v900_v15 = vperm.slane %v896_v58, 2  ;;  %v901_v16 = vperm.slane %v896_v58, 3  ;;  %v898_v18 = vperm.slane %v896_v58, 0 }
  0x9f   : > { %v902_v19 = vrot.slane %v899_v13, 6  ;;  %v903_v21 = vrot.slane %v900_v15, 4  ;;  %v904_v22 = vrot.slane %v901_v16, 2 }
  0xa1   : > { %v905_v26 = vsel %vm883_vm1, %v898_v18, %v902_v19  ;;  %v906_v31 = vsel %vm885_vm0, %v903_v21, %v904_v22 }
  0xa2   : > { %v907_v34 = vsel %vm887_vm2, %v905_v26, %v906_v31 }
  0xf8   : > { %v781_v5 = vpop.f32.mrf.mxu0 }
  0xfb   : > { %v794_v6 = vpop.f32.mrf.mxu1 }
  0xfc   : > { %v795_v24 = vadd.f32 %v794_v6, %v781_v5 }
  0xff   : > { %v807_v7 = vpop.f32.mrf.mxu2 }
 0x100   : > { %v783_v9 = vpop.f32.mrf.mxu0 }
 0x102   : > { %v820_v8 = vpop.f32.mrf.mxu3 }
 0x103   : > { %v796_v10 = vpop.f32.mrf.mxu1  ;;  %v821_v17 = vadd.f32 %v820_v8, %v807_v7 }
 0x105   : > { %v880_v25 = vrot.slane %v821_v17, 6 }
 0x107   : > { %v809_v11 = vpop.f32.mrf.mxu2  ;;  %v884_v35 = vsel %vm883_vm1, %v795_v24, %v880_v25 }
 0x10a   : > { %v822_v12 = vpop.f32.mrf.mxu3 }
 0x118   : > { %v833_v59 = vpop.f32.mrf.mxu0 }
 0x119   : > { %v846_v14 = vpop.f32.mrf.mxu1 }
 0x11a   : > { %v847_v20 = vadd.f32 %v846_v14, %v833_v59 }
 0x11c   : > { %v881_v29 = vrot.slane %v847_v20, 4 }
 0x11f   : > { %v859_v23 = vpop.f32.mrf.mxu2 }
 0x120   : > { %v872_v27 = vpop.f32.mrf.mxu3  ;;  %v835_v28 = vpop.f32.mrf.mxu0 }
 0x121   : > { %v873_v30 = vadd.f32 %v872_v27, %v859_v23  ;;  %v848_v32 = vpop.f32.mrf.mxu1 }
 0x123   : > { %v882_v33 = vrot.slane %v873_v30, 2 }
 0x125   : > { %v886_v36 = vsel %vm885_vm0, %v881_v29, %v882_v33 }
 0x126   : > { %v888_v37 = vsel %vm887_vm2, %v884_v35, %v886_v36 }
 0x127   : > { %v909_v38 = vadd.f32 %v907_v34, %v888_v37  ;;  %v861_v39 = vpop.f32.mrf.mxu2 }
 0x128   : > { %v874_v40 = vpop.f32.mrf.mxu3 }
 0x129   : > { %910 = vst [vmem:[%s373_s14] sm:$0xff] %v909_v38 }
 0x12a PF: > { %s13_s16 = sadd.s32 1, %s1420_s16   ;;  %s1797_s12 = smov %s1408_s13 }
 0x12b   : > { %p10_p10 = scmp.ge.s32.totalorder %s13_s16, 9   ;;  %s1798_s13 = smov %s1477_s20 }
 0x12c   : > { %s1799_s14 = smov %s1416_s15  ;;  %s1800_s15 = smov %s1802_s17 }
 0x12d   :  { %12 = sbr.rel (!%p10_p10) target bundleno = 3 (0x3), region = 104 }

</bundles_post_ra>
